<compile_context>
chip_gen: v5e
topology: v5e:2x2
jax: 0.10.0
libtpu: 0.0.40
codegen_flags: <defaults>
</compile_context>

<pallas_src>
import math
import functools

import jax
import jax.numpy as jnp
from jax.experimental import pallas as pl
from jax.experimental.pallas import tpu as pltpu

_LANE = 128
_SUBLANE = 8


def _round_up(x, m):
    return (x + m - 1) // m * m


# ---------------------------------------------------------------------------
# One-time parameter preparation: pad / rearrange weights (hoisted out of forward)
# ---------------------------------------------------------------------------
def prepare_params(raw, *, n_head):
    C = raw["ln1_g"].shape[0]
    H = raw["w1_t"].shape[1]
    hs = C // n_head
    Cp = _round_up(C, _LANE)
    hs_p = _round_up(hs, _LANE)          # per-head feature dim padded to full lanes
    Hd = n_head * hs_p
    Hp = _round_up(H, _LANE)

    def head_cols(w, b):
        # (C, n_head*hs) -> (Cp, n_head*hs_p); head h occupies lanes [h*hs_p, h*hs_p+hs)
        w3 = w.reshape(C, n_head, hs)
        w3 = jnp.pad(w3, ((0, Cp - C), (0, 0), (0, hs_p - hs)))
        b2 = jnp.pad(b.reshape(n_head, hs), ((0, 0), (0, hs_p - hs)))
        return w3.reshape(Cp, Hd), b2.reshape(1, Hd)

    wq, bq = head_cols(raw["wq_t"], raw["bq"])
    wk, bk = head_cols(raw["wk_t"], raw["bk"])
    wv, bv = head_cols(raw["wv_t"], raw["bv"])
    wqkv = jnp.concatenate([wq, wk, wv], axis=1)        # (Cp, 3*Hd)
    bqkv = jnp.concatenate([bq, bk, bv], axis=1)        # (1, 3*Hd)

    # projection weight in (n_head, hs_p, Cp) layout so proj = sum_h o_h @ wp3[h]
    wp3 = raw["wp_t"].reshape(n_head, hs, C)
    wp3 = jnp.pad(wp3, ((0, 0), (0, hs_p - hs), (0, Cp - C)))
    bp = jnp.pad(raw["bp"].reshape(1, C), ((0, 0), (0, Cp - C)))

    pad_vec = lambda v: jnp.pad(v.reshape(1, -1), ((0, 0), (0, Cp - C)))
    return dict(
        ln1_g=pad_vec(raw["ln1_g"]), ln1_b=pad_vec(raw["ln1_b"]),
        wqkv=wqkv, bqkv=bqkv, wp3=wp3, bp=bp,
        ln2_g=pad_vec(raw["ln2_g"]), ln2_b=pad_vec(raw["ln2_b"]),
        w1=jnp.pad(raw["w1_t"], ((0, Cp - C), (0, Hp - H))),
        b1=jnp.pad(raw["b1"].reshape(1, H), ((0, 0), (0, Hp - H))),
        w2=jnp.pad(raw["w2_t"], ((0, Hp - H), (0, Cp - C))),
        b2=pad_vec(raw["b2"]),
    )


# ---------------------------------------------------------------------------
# Kernel 1: fused LN1 + multi-head causal self-attention + proj + residual
# grid = (batch [parallel], query-row tiles [arbitrary])
# ---------------------------------------------------------------------------
def _attn_kernel(x_ref, g_ref, be_ref, wqkv_ref, bqkv_ref, wp3_ref, bp_ref,
                 o_ref, q_scr, k_scr, v_scr,
                 *, n_head, hs_p, scale, eps, c_real, t_real, tq):
    qi = pl.program_id(1)
    Tp, Cp = x_ref.shape[1], x_ref.shape[2]
    Hd = n_head * hs_p
    cd = wqkv_ref.dtype                                   # native MXU operand dtype

    @pl.when(qi == 0)
    def _():
        # LayerNorm over the real C channels (padded lanes are zero), f32, two-pass variance.
        x = x_ref[0].astype(jnp.float32)                  # (Tp, Cp)
        ch = jax.lax.broadcasted_iota(jnp.int32, (1, Cp), 1) < c_real
        inv_c = 1.0 / c_real
        mu = jnp.sum(x, axis=-1, keepdims=True) * inv_c
        d = jnp.where(ch, x - mu, 0.0)
        var = jnp.sum(d * d, axis=-1, keepdims=True) * inv_c
        xln = d * jax.lax.rsqrt(var + eps)
        xln = xln * g_ref[...].astype(jnp.float32) + be_ref[...].astype(jnp.float32)

        # Q/K/V for the whole (padded) sequence in one matmul; stash per-head in scratch.
        qkv = jnp.dot(xln.astype(cd), wqkv_ref[...], preferred_element_type=jnp.float32)
        qkv = (qkv + bqkv_ref[...].astype(jnp.float32)).astype(cd)   # (Tp, 3*Hd)
        for h in range(n_head):                            # static, lane-aligned slices
            q_scr[h] = qkv[:, h * hs_p:(h + 1) * hs_p]
            k_scr[h] = qkv[:, Hd + h * hs_p:Hd + (h + 1) * hs_p]
            v_scr[h] = qkv[:, 2 * Hd + h * hs_p:2 * Hd + (h + 1) * hs_p]

    row0 = pl.multiple_of(qi * tq, _SUBLANE)
    q3 = q_scr[:, pl.ds(row0, tq), :]                      # (n_head, tq, hs_p)
    k3 = k_scr[...]                                        # (n_head, Tp, hs_p)
    v3 = v_scr[...]

    # Batched (over heads) scores; scale = n_embd**-0.5 exactly as the reference module.
    s = jnp.einsum('hqd,hkd->hqk', q3, k3, preferred_element_type=jnp.float32) * scale
    rows = row0 + jax.lax.broadcasted_iota(jnp.int32, (1, tq, Tp), 1)
    cols = jax.lax.broadcasted_iota(jnp.int32, (1, tq, Tp), 2)
    mask = (cols <= rows) & (cols < t_real)                # causal + padded-key mask
    s = jnp.where(mask, s, -1e30)                          # f32 score path
    s = s - jnp.max(s, axis=-1, keepdims=True)
    p = jnp.exp(s)
    p = p * pl.reciprocal(jnp.sum(p, axis=-1, keepdims=True), approx=True)
    # attention dropout: eval / p=0 -> identity

    o = jnp.einsum('hqk,hkd->hqd', p.astype(cd), v3, preferred_element_type=jnp.float32)
    # output projection: sum over heads of o_h @ Wp[h]  (no lane-axis concat needed)
    proj = jnp.einsum('hqd,hdc->hqc', o.astype(cd), wp3_ref[...],
                      preferred_element_type=jnp.float32)
    proj = jnp.sum(proj, axis=0) + bp_ref[...].astype(jnp.float32)
    # proj dropout: eval / p=0 -> identity

    xq = x_ref[0, pl.ds(row0, tq), :].astype(jnp.float32)  # residual with pre-LN input rows
    o_ref[0] = (xq + proj).astype(o_ref.dtype)


def _attn_half_block(x, g, b, wqkv, bqkv, wp3, bp, *, n_head, tq=256):
    B, T, C = x.shape
    Cp = g.shape[-1]
    hs_p = wp3.shape[1]

    tq = max(_SUBLANE, min(_round_up(tq, _SUBLANE), _round_up(T, _SUBLANE)))
    Tp = _round_up(T, tq)
    xp = jnp.pad(x, ((0, 0), (0, Tp - T), (0, Cp - C)))    # lane-dense channels, padded rows
    cd = wqkv.dtype

    kern = functools.partial(_attn_kernel, n_head=n_head, hs_p=hs_p,
                             scale=float(C) ** -0.5, eps=1e-5,
                             c_real=C, t_real=T, tq=tq)
    wvmem = pl.BlockSpec(memory_space=pltpu.MemorySpace.VMEM)   # invariant weights: whole-array,
                                                                # single-buffered VMEM residents
    out = pl.pallas_call(
        kern,
        out_shape=jax.ShapeDtypeStruct((B, Tp, Cp), x.dtype),
        grid_spec=pltpu.PrefetchScalarGridSpec(
            num_scalar_prefetch=0,
            grid=(B, Tp // tq),
            in_specs=[pl.BlockSpec((1, Tp, Cp), lambda bi, qi: (bi, 0, 0)),  # x (full seq)
                      wvmem, wvmem,                 # ln1 gamma / beta
                      wvmem, wvmem,                 # Wqkv, bqkv
                      wvmem, wvmem],                # Wproj (n_head, hs_p, Cp), bproj
            out_specs=pl.BlockSpec((1, tq, Cp), lambda bi, qi: (bi, qi, 0)),
            scratch_shapes=[pltpu.VMEM((n_head, Tp, hs_p), cd),   # q
                            pltpu.VMEM((n_head, Tp, hs_p), cd),   # k
                            pltpu.VMEM((n_head, Tp, hs_p), cd)],  # v
        ),
        compiler_params=pltpu.CompilerParams(
            dimension_semantics=("parallel", "arbitrary"),
            vmem_limit_bytes=48 * 1024 * 1024,       # explicit budget, fits v7x's 64 MiB
        ),
    )(xp, g, b, wqkv, bqkv, wp3, bp)
    return out[:, :T, :]                             # drop padded rows, keep padded channels


# ---------------------------------------------------------------------------
# Kernel 2: fused LN2 + FeedForward (lin1 -> exact GELU -> lin2) + residual
# grid = (row tiles [parallel], hidden slabs [reduction, innermost])
# ---------------------------------------------------------------------------
def _ffn_kernel(y_ref, g_ref, be_ref, w1_ref, b1_ref, w2_ref, b2_ref,
                o_ref, acc_ref, xln_ref, *, c_real, eps):
    j = pl.program_id(1)

    @pl.when(j == 0)
    def _():
        y = y_ref[...].astype(jnp.float32)                 # (tm, Cp); padded lanes are zero
        Cp = y.shape[-1]
        ch = jax.lax.broadcasted_iota(jnp.int32, (1, Cp), 1) < c_real
        inv_c = 1.0 / c_real
        mu = jnp.sum(y, axis=-1, keepdims=True) * inv_c    # stats over real channels only
        d = jnp.where(ch, y - mu, 0.0)
        var = jnp.sum(d * d, axis=-1, keepdims=True) * inv_c   # two-pass (no cancellation)
        xln = d * jax.lax.rsqrt(var + eps)
        xln = xln * g_ref[...].astype(jnp.float32) + be_ref[...].astype(jnp.float32)
        xln_ref[...] = xln.astype(xln_ref.dtype)           # stored once in compute dtype
        acc_ref[...] = y                                   # residual pre-loaded into accumulator

    # lin1 slab -> exact (erf) GELU -> lin2 slab, accumulate in f32.
    h = jnp.dot(xln_ref[...], w1_ref[...], preferred_element_type=jnp.float32)
    h = h + b1_ref[...].astype(jnp.float32)
    h = 0.5 * h * (1.0 + jax.lax.erf(h * (1.0 / math.sqrt(2.0))))   # nn.GELU(approximate='none')
    acc_ref[...] += jnp.dot(h.astype(w2_ref.dtype), w2_ref[...],
                            preferred_element_type=jnp.float32)

    @pl.when(j == pl.num_programs(1) - 1)
    def _():
        # final bias; dropout (p=0 -> identity); residual already folded into acc.
        o_ref[...] = (acc_ref[...] + b2_ref[...].astype(jnp.float32)).astype(o_ref.dtype)


def _ffn_half_block(y, g, b, w1, b1, w2, b2, *, c_real, tm=256, th=512):
    B, T, Cp = y.shape
    Hp = w1.shape[1]
    M = B * T
    cd = w1.dtype

    # Row tile: big, clamped to the problem; force >= 2 tiles when possible (v7x 2 TCs).
    tm = max(_SUBLANE, min(_round_up(tm, _SUBLANE), _round_up(M, _SUBLANE)))
    if _round_up(M, tm) // tm < 2 and M > _SUBLANE:
        tm = max(_SUBLANE, _round_up((M + 1) // 2, _SUBLANE))
    Mp = _round_up(M, tm)

    # Hold W1/W2 fully resident when they fit comfortably (v5e/v6e 128 MiB, v7x 64 MiB);
    # otherwise stream 128-multiple hidden slabs along the reduction axis.
    if 2 * 2 * Cp * Hp * cd.itemsize <= 24 * 1024 * 1024:
        th = Hp
    th_req = max(_LANE, min(_round_up(th, _LANE), Hp))
    th = _LANE
    cand = _LANE
    while cand <= th_req:                                  # largest 128-multiple dividing Hp
        if Hp % cand == 0:
            th = cand
        cand += _LANE

    y2 = y.reshape(M, Cp)
    if Mp > M:
        y2 = jnp.pad(y2, ((0, Mp - M), (0, 0)))

    kern = functools.partial(_ffn_kernel, c_real=c_real, eps=1e-5)
    wvmem = pl.BlockSpec(memory_space=pltpu.MemorySpace.VMEM)
    out = pl.pallas_call(
        kern,
        out_shape=jax.ShapeDtypeStruct((Mp, Cp), y.dtype),
        grid_spec=pltpu.PrefetchScalarGridSpec(
            num_scalar_prefetch=0,
            grid=(Mp // tm, Hp // th),
            in_specs=[
                pl.BlockSpec((tm, Cp), lambda i, j: (i, 0)),   # LN/residual input rows
                wvmem, wvmem,                                  # ln2 gamma / beta (resident)
                pl.BlockSpec((Cp, th), lambda i, j: (0, j)),   # W1 slab (streamed over j)
                pl.BlockSpec((1, th), lambda i, j: (0, j)),    # b1 slab
                pl.BlockSpec((th, Cp), lambda i, j: (j, 0)),   # W2 slab (streamed over j)
                wvmem,                                         # b2 (resident)
            ],
            out_specs=pl.BlockSpec((tm, Cp), lambda i, j: (i, 0)),
            scratch_shapes=[pltpu.VMEM((tm, Cp), jnp.float32),   # f32 accumulator (+residual)
                            pltpu.VMEM((tm, Cp), cd)],           # normalized rows (compute dtype)
        ),
        compiler_params=pltpu.CompilerParams(
            dimension_semantics=("parallel", "arbitrary"),
            vmem_limit_bytes=48 * 1024 * 1024,
        ),
    )(y2, g, b, w1, b1, w2, b2)

    return out[:M].reshape(B, T, Cp)


# ---------------------------------------------------------------------------
# Full Block forward (params must come from prepare_params)
# ---------------------------------------------------------------------------
@functools.partial(jax.jit,
                   static_argnames=("n_head", "ctx_size", "layer", "fade", "tq", "tm", "th"))
def block_forward(x, params, *, n_head, ctx_size, layer, fade=True, tq=256, tm=256, th=512):
    p = params
    C = x.shape[-1]
    # out = x + MultiHeadAttention(LN1(x))        (channels stay 128-padded between kernels)
    out = _attn_half_block(x, p["ln1_g"], p["ln1_b"],
                           p["wqkv"], p["bqkv"], p["wp3"], p["bp"],
                           n_head=n_head, tq=tq)
    # fade: keep only the last ctx_size // 2**(layer+1) tokens
    if fade:
        t = ctx_size // 2 ** (layer + 1)
        if out.shape[1] > t:
            out = out[:, -t:, :]
    # out = out + FeedForward(LN2(out))
    out = _ffn_half_block(out, p["ln2_g"], p["ln2_b"],
                          p["w1"], p["b1"], p["w2"], p["b2"],
                          c_real=C, tm=tm, th=th)
    return out[..., :C]


# ---------------------------------------------------------------------------
# Pure-JAX reference (mirrors the PyTorch Block forward)
# ---------------------------------------------------------------------------
def _block_ref(x, p, *, n_head, ctx_size, layer, fade=True, eps=1e-5):
    def ln(z, g, b):
        mu = jnp.mean(z, axis=-1, keepdims=True)
        var = jnp.mean(jnp.square(z - mu), axis=-1, keepdims=True)
        return (z - mu) / jnp.sqrt(var + eps) * g + b

    B, T, C = x.shape
    hs = C // n_head
    xln = ln(x, p["ln1_g"], p["ln1_b"])
    q = xln @ p["wq_t"] + p["bq"]
    k = xln @ p["wk_t"] + p["bk"]
    v = xln @ p["wv_t"] + p["bv"]
    mask = jnp.tril(jnp.ones((T, T), dtype=bool))
    heads = []
    for h in range(n_head):
        sl = slice(h * hs, (h + 1) * hs)
        att = jnp.einsum("btd,bsd->bts", q[..., sl], k[..., sl]) * (C ** -0.5)
        att = jnp.where(mask, att, -jnp.inf)
        att = jax.nn.softmax(att, axis=-1)
        heads.append(jnp.einsum("bts,bsd->btd", att, v[..., sl]))
    y = jnp.concatenate(heads, axis=-1)
    out = x + (y @ p["wp_t"] + p["bp"])
    if fade:
        t = ctx_size // 2 ** (layer + 1)
        if out.shape[1] > t:
            out = out[:, -t:, :]
    z = ln(out, p["ln2_g"], p["ln2_b"])
    h = z @ p["w1_t"] + p["b1"]
    h = 0.5 * h * (1.0 + jax.lax.erf(h * (1.0 / math.sqrt(2.0))))
    return out + (h @ p["w2_t"] + p["b2"])


if __name__ == "__main__":
    # config: n_embd=32, n_head=4, ctx_size=8, bias=True, dropout=0.0, fade=True, layer=0
    B, T, C = 2, 8, 32
    n_head, ctx_size, layer = 4, 8, 0
    H = 4 * C
    assert C % n_head == 0

    key = jax.random.PRNGKey(0)
    ks = jax.random.split(key, 13)

    def uni(k, shape, fan_in):
        bound = 1.0 / math.sqrt(fan_in)
        return jax.random.uniform(k, shape, minval=-bound, maxval=bound, dtype=jnp.float32)

    x = jax.random.normal(ks[0], (B, T, C), dtype=jnp.float32)

    raw_params = dict(
        ln1_g=jnp.ones((C,), jnp.float32), ln1_b=jnp.zeros((C,), jnp.float32),
        ln2_g=jnp.ones((C,), jnp.float32), ln2_b=jnp.zeros((C,), jnp.float32),
        # per-head q/k/v Linears concatenated over heads, pre-transposed to (C_in, C_out)
        wq_t=uni(ks[1], (C, C), C), bq=uni(ks[2], (C,), C),
        wk_t=uni(ks[3], (C, C), C), bk=uni(ks[4], (C,), C),
        wv_t=uni(ks[5], (C, C), C), bv=uni(ks[6], (C,), C),
        wp_t=uni(ks[7], (C, C), C), bp=uni(ks[8], (C,), C),
        # FeedForward weights, pre-transposed for row-major x @ W^T
        w1_t=uni(ks[9], (C, H), C), b1=uni(ks[10], (H,), C),
        w2_t=uni(ks[11], (H, C), H), b2=uni(ks[12], (C,), H),
    )

    # One-time weight padding / head-layout rearrangement (hoisted out of the forward path).
    params = prepare_params(raw_params, n_head=n_head)

    out = block_forward(x, params, n_head=n_head, ctx_size=ctx_size, layer=layer, fade=True)
    out = jax.block_until_ready(out)

    ref = _block_ref(x, raw_params, n_head=n_head, ctx_size=ctx_size, layer=layer, fade=True)
    t_keep = ctx_size // 2 ** (layer + 1)
    assert out.shape == (B, min(T, t_keep), C)
    # tolerance accounts for the EUP approximate reciprocal in the softmax normalization
    assert jnp.allclose(out, ref, atol=3e-3, rtol=3e-3), float(jnp.max(jnp.abs(out - ref)))

    print("KERNEL_OK")
</pallas_src>

<mosaic_0001>
module attributes {stable_mosaic.version = 11 : i64} {
  func.func @_ffn_kernel(%arg0: i32, %arg1: i32, %arg2: memref<8x128xf32, #tpu.memory_space<vmem>>, %arg3: memref<1x128xf32, #tpu.memory_space<vmem>>, %arg4: memref<1x128xf32, #tpu.memory_space<vmem>>, %arg5: memref<128x128xf32, #tpu.memory_space<vmem>>, %arg6: memref<1x128xf32, #tpu.memory_space<vmem>>, %arg7: memref<128x128xf32, #tpu.memory_space<vmem>>, %arg8: memref<1x128xf32, #tpu.memory_space<vmem>>, %arg9: memref<8x128xf32, #tpu.memory_space<vmem>>, %arg10: memref<8x128xf32, #tpu.memory_space<vmem>>, %arg11: memref<8x128xf32, #tpu.memory_space<vmem>>) attributes {dimension_semantics = [#tpu.dimension_semantics<parallel>, #tpu.dimension_semantics<arbitrary>], iteration_bounds = array<i64: 1, 1>, scalar_prefetch = 0 : i64, scratch_operands = 2 : i64, tpu.core_type = #tpu.core_type<tc>, window_params = [{transform_indices = @transform_0, window_bounds = array<i64: 8, 128>}, {pipeline_mode = #tpu.pipeline_mode<synchronous>, transform_indices = @transform_1, window_bounds = array<i64: 1, 128>}, {pipeline_mode = #tpu.pipeline_mode<synchronous>, transform_indices = @transform_2, window_bounds = array<i64: 1, 128>}, {transform_indices = @transform_3, window_bounds = array<i64: 128, 128>}, {transform_indices = @transform_4, window_bounds = array<i64: 1, 128>}, {transform_indices = @transform_5, window_bounds = array<i64: 128, 128>}, {pipeline_mode = #tpu.pipeline_mode<synchronous>, transform_indices = @transform_6, window_bounds = array<i64: 1, 128>}, {transform_indices = @transform_7, window_bounds = array<i64: 8, 128>}]} {
    %c0_i32 = arith.constant 0 : i32
    %0 = arith.cmpi eq, %arg1, %c0_i32 : i32
    %1 = arith.extui %0 : i1 to i32
    %c0_i32_0 = arith.constant 0 : i32
    %2 = arith.cmpi ne, %1, %c0_i32_0 : i32
    scf.if %2 {
      %c0_18 = arith.constant 0 : index
      %c0_19 = arith.constant 0 : index
      %25 = vector.load %arg2[%c0_18, %c0_19] : memref<8x128xf32, #tpu.memory_space<vmem>>, vector<8x128xf32>
      %26 = tpu.iota {dimensions = array<i32: 1>} : vector<1x128xi32>
      %c32_i32 = arith.constant 32 : i32
      %27 = vector.broadcast %c32_i32 : i32 to vector<1x128xi32>
      %28 = arith.cmpi slt, %26, %27 : vector<1x128xi32>
      %cst_20 = arith.constant dense<0.000000e+00> : vector<8xf32>
      %29 = vector.multi_reduction <add>, %25, %cst_20 [1] : vector<8x128xf32> to vector<8xf32>
      %30 = vector.shape_cast %29 : vector<8xf32> to vector<8x1xf32>
      %cst_21 = arith.constant 3.125000e-02 : f32
      %31 = vector.broadcast %cst_21 : f32 to vector<8x1xf32>
      %32 = arith.mulf %30, %31 : vector<8x1xf32>
      %33 = vector.broadcast %32 : vector<8x1xf32> to vector<8x128xf32>
      %34 = arith.subf %25, %33 : vector<8x128xf32>
      %cst_22 = arith.constant 0.000000e+00 : f32
      %35 = vector.shape_cast %28 : vector<1x128xi1> to vector<1x128xi1>
      %36 = vector.broadcast %35 : vector<1x128xi1> to vector<8x128xi1>
      %37 = vector.broadcast %cst_22 : f32 to vector<8x128xf32>
      %38 = arith.select %36, %34, %37 : vector<8x128xi1>, vector<8x128xf32>
      %39 = arith.mulf %38, %38 : vector<8x128xf32>
      %cst_23 = arith.constant dense<0.000000e+00> : vector<8xf32>
      %40 = vector.multi_reduction <add>, %39, %cst_23 [1] : vector<8x128xf32> to vector<8xf32>
      %41 = vector.shape_cast %40 : vector<8xf32> to vector<8x1xf32>
      %cst_24 = arith.constant 3.125000e-02 : f32
      %42 = vector.broadcast %cst_24 : f32 to vector<8x1xf32>
      %43 = arith.mulf %41, %42 : vector<8x1xf32>
      %cst_25 = arith.constant 9.99999974E-6 : f32
      %44 = vector.broadcast %cst_25 : f32 to vector<8x1xf32>
      %45 = arith.addf %43, %44 : vector<8x1xf32>
      %46 = math.rsqrt %45 : vector<8x1xf32>
      %47 = vector.broadcast %46 : vector<8x1xf32> to vector<8x128xf32>
      %48 = arith.mulf %38, %47 : vector<8x128xf32>
      %c0_26 = arith.constant 0 : index
      %c0_27 = arith.constant 0 : index
      %49 = vector.load %arg3[%c0_26, %c0_27] : memref<1x128xf32, #tpu.memory_space<vmem>>, vector<1x128xf32>
      %50 = vector.broadcast %49 : vector<1x128xf32> to vector<8x128xf32>
      %51 = arith.mulf %48, %50 : vector<8x128xf32>
      %c0_28 = arith.constant 0 : index
      %c0_29 = arith.constant 0 : index
      %52 = vector.load %arg4[%c0_28, %c0_29] : memref<1x128xf32, #tpu.memory_space<vmem>>, vector<1x128xf32>
      %53 = vector.broadcast %52 : vector<1x128xf32> to vector<8x128xf32>
      %54 = arith.addf %51, %53 : vector<8x128xf32>
      %c0_30 = arith.constant 0 : index
      %c0_31 = arith.constant 0 : index
      %55 = vector.load %arg11[%c0_30, %c0_31] : memref<8x128xf32, #tpu.memory_space<vmem>>, vector<8x128xf32>
      tpu.vector_store %arg11[%c0_30, %c0_31], %54 {strides = array<i32>} : memref<8x128xf32, #tpu.memory_space<vmem>>, vector<8x128xf32>,
      %c0_32 = arith.constant 0 : index
      %c0_33 = arith.constant 0 : index
      %56 = vector.load %arg10[%c0_32, %c0_33] : memref<8x128xf32, #tpu.memory_space<vmem>>, vector<8x128xf32>
      tpu.vector_store %arg10[%c0_32, %c0_33], %25 {strides = array<i32>} : memref<8x128xf32, #tpu.memory_space<vmem>>, vector<8x128xf32>,
    } else {
    }
    %c0 = arith.constant 0 : index
    %c0_1 = arith.constant 0 : index
    %3 = vector.load %arg11[%c0, %c0_1] : memref<8x128xf32, #tpu.memory_space<vmem>>, vector<8x128xf32>
    %c0_2 = arith.constant 0 : index
    %c0_3 = arith.constant 0 : index
    %4 = vector.load %arg5[%c0_2, %c0_3] : memref<128x128xf32, #tpu.memory_space<vmem>>, vector<128x128xf32>
    %cst = arith.constant dense<0.000000e+00> : vector<8x128xf32>
    %5 = tpu.matmul %3, %4, %cst {dimension_numbers = #tpu.dot_dimension_numbers<[1], [0], [0], [1], [0, 0, 1, 1], [], []>} : vector<8x128xf32>, vector<128x128xf32>, vector<8x128xf32> -> vector<8x128xf32>
    %c0_4 = arith.constant 0 : index
    %c0_5 = arith.constant 0 : index
    %6 = vector.load %arg6[%c0_4, %c0_5] : memref<1x128xf32, #tpu.memory_space<vmem>>, vector<1x128xf32>
    %7 = vector.broadcast %6 : vector<1x128xf32> to vector<8x128xf32>
    %8 = arith.addf %5, %7 : vector<8x128xf32>
    %cst_6 = arith.constant 5.000000e-01 : f32
    %9 = vector.broadcast %cst_6 : f32 to vector<8x128xf32>
    %10 = arith.mulf %9, %8 : vector<8x128xf32>
    %cst_7 = arith.constant 0.707106769 : f32
    %11 = vector.broadcast %cst_7 : f32 to vector<8x128xf32>
    %12 = arith.mulf %8, %11 : vector<8x128xf32>
    %13 = math.erf %12 : vector<8x128xf32>
    %cst_8 = arith.constant 1.000000e+00 : f32
    %14 = vector.broadcast %cst_8 : f32 to vector<8x128xf32>
    %15 = arith.addf %14, %13 : vector<8x128xf32>
    %16 = arith.mulf %10, %15 : vector<8x128xf32>
    %c0_9 = arith.constant 0 : index
    %c0_10 = arith.constant 0 : index
    %17 = vector.load %arg10[%c0_9, %c0_10] : memref<8x128xf32, #tpu.memory_space<vmem>>, vector<8x128xf32>
    %c0_11 = arith.constant 0 : index
    %c0_12 = arith.constant 0 : index
    %18 = vector.load %arg7[%c0_11, %c0_12] : memref<128x128xf32, #tpu.memory_space<vmem>>, vector<128x128xf32>
    %cst_13 = arith.constant dense<0.000000e+00> : vector<8x128xf32>
    %19 = tpu.matmul %16, %18, %cst_13 {dimension_numbers = #tpu.dot_dimension_numbers<[1], [0], [0], [1], [0, 0, 1, 1], [], []>} : vector<8x128xf32>, vector<128x128xf32>, vector<8x128xf32> -> vector<8x128xf32>
    %20 = arith.addf %17, %19 : vector<8x128xf32>
    %c0_14 = arith.constant 0 : index
    %c0_15 = arith.constant 0 : index
    %21 = vector.load %arg10[%c0_14, %c0_15] : memref<8x128xf32, #tpu.memory_space<vmem>>, vector<8x128xf32>
    tpu.vector_store %arg10[%c0_14, %c0_15], %20 {strides = array<i32>} : memref<8x128xf32, #tpu.memory_space<vmem>>, vector<8x128xf32>,
    %c0_i32_16 = arith.constant 0 : i32
    %22 = arith.cmpi eq, %arg1, %c0_i32_16 : i32
    %23 = arith.extui %22 : i1 to i32
    %c0_i32_17 = arith.constant 0 : i32
    %24 = arith.cmpi ne, %23, %c0_i32_17 : i32
    scf.if %24 {
      %c0_18 = arith.constant 0 : index
      %c0_19 = arith.constant 0 : index
      %25 = vector.load %arg10[%c0_18, %c0_19] : memref<8x128xf32, #tpu.memory_space<vmem>>, vector<8x128xf32>
      %c0_20 = arith.constant 0 : index
      %c0_21 = arith.constant 0 : index
      %26 = vector.load %arg8[%c0_20, %c0_21] : memref<1x128xf32, #tpu.memory_space<vmem>>, vector<1x128xf32>
      %27 = vector.broadcast %26 : vector<1x128xf32> to vector<8x128xf32>
      %28 = arith.addf %25, %27 : vector<8x128xf32>
      %c0_22 = arith.constant 0 : index
      %c0_23 = arith.constant 0 : index
      %29 = vector.load %arg9[%c0_22, %c0_23] : memref<8x128xf32, #tpu.memory_space<vmem>>, vector<8x128xf32>
      tpu.vector_store %arg9[%c0_22, %c0_23], %28 {strides = array<i32>} : memref<8x128xf32, #tpu.memory_space<vmem>>, vector<8x128xf32>,
    } else {
    }
    return
  }
  func.func @transform_0(%arg0: i32, %arg1: i32) -> (i32, i32) {
    %c0_i32 = arith.constant 0 : i32
    %c0_i32_0 = arith.constant 0 : i32
    return %arg0, %c0_i32 : i32, i32
  }
  func.func @transform_1(%arg0: i32, %arg1: i32) -> (i32, i32) {
    %c0_i32 = arith.constant 0 : i32
    %c0_i32_0 = arith.constant 0 : i32
    %c0_i32_1 = arith.constant 0 : i32
    return %c0_i32, %c0_i32_0 : i32, i32
  }
  func.func @transform_2(%arg0: i32, %arg1: i32) -> (i32, i32) {
    %c0_i32 = arith.constant 0 : i32
    %c0_i32_0 = arith.constant 0 : i32
    %c0_i32_1 = arith.constant 0 : i32
    return %c0_i32, %c0_i32_0 : i32, i32
  }
  func.func @transform_3(%arg0: i32, %arg1: i32) -> (i32, i32) {
    %c0_i32 = arith.constant 0 : i32
    %c0_i32_0 = arith.constant 0 : i32
    return %c0_i32, %arg1 : i32, i32
  }
  func.func @transform_4(%arg0: i32, %arg1: i32) -> (i32, i32) {
    %c0_i32 = arith.constant 0 : i32
    %c0_i32_0 = arith.constant 0 : i32
    return %c0_i32, %arg1 : i32, i32
  }
  func.func @transform_5(%arg0: i32, %arg1: i32) -> (i32, i32) {
    %c0_i32 = arith.constant 0 : i32
    %c0_i32_0 = arith.constant 0 : i32
    return %arg1, %c0_i32 : i32, i32
  }
  func.func @transform_6(%arg0: i32, %arg1: i32) -> (i32, i32) {
    %c0_i32 = arith.constant 0 : i32
    %c0_i32_0 = arith.constant 0 : i32
    %c0_i32_1 = arith.constant 0 : i32
    return %c0_i32, %c0_i32_0 : i32, i32
  }
  func.func @transform_7(%arg0: i32, %arg1: i32) -> (i32, i32) {
    %c0_i32 = arith.constant 0 : i32
    %c0_i32_0 = arith.constant 0 : i32
    return %arg0, %c0_i32 : i32, i32
  }
}

module attributes {stable_mosaic.version = 11 : i64} {
  func.func @_attn_kernel(%arg0: i32, %arg1: i32, %arg2: memref<1x8x128xf32, #tpu.memory_space<vmem>>, %arg3: memref<1x128xf32, #tpu.memory_space<vmem>>, %arg4: memref<1x128xf32, #tpu.memory_space<vmem>>, %arg5: memref<128x1536xf32, #tpu.memory_space<vmem>>, %arg6: memref<1x1536xf32, #tpu.memory_space<vmem>>, %arg7: memref<4x128x128xf32, #tpu.memory_space<vmem>>, %arg8: memref<1x128xf32, #tpu.memory_space<vmem>>, %arg9: memref<1x8x128xf32, #tpu.memory_space<vmem>>, %arg10: memref<4x8x128xf32, #tpu.memory_space<vmem>>, %arg11: memref<4x8x128xf32, #tpu.memory_space<vmem>>, %arg12: memref<4x8x128xf32, #tpu.memory_space<vmem>>) attributes {dimension_semantics = [#tpu.dimension_semantics<parallel>, #tpu.dimension_semantics<arbitrary>], iteration_bounds = array<i64: 2, 1>, scalar_prefetch = 0 : i64, scratch_operands = 3 : i64, tpu.core_type = #tpu.core_type<tc>, window_params = [{transform_indices = @transform_0, window_bounds = array<i64: 1, 8, 128>}, {pipeline_mode = #tpu.pipeline_mode<synchronous>, transform_indices = @transform_1, window_bounds = array<i64: 1, 128>}, {pipeline_mode = #tpu.pipeline_mode<synchronous>, transform_indices = @transform_2, window_bounds = array<i64: 1, 128>}, {pipeline_mode = #tpu.pipeline_mode<synchronous>, transform_indices = @transform_3, window_bounds = array<i64: 128, 1536>}, {pipeline_mode = #tpu.pipeline_mode<synchronous>, transform_indices = @transform_4, window_bounds = array<i64: 1, 1536>}, {pipeline_mode = #tpu.pipeline_mode<synchronous>, transform_indices = @transform_5, window_bounds = array<i64: 4, 128, 128>}, {pipeline_mode = #tpu.pipeline_mode<synchronous>, transform_indices = @transform_6, window_bounds = array<i64: 1, 128>}, {transform_indices = @transform_7, window_bounds = array<i64: 1, 8, 128>}]} {
    %c0_i32 = arith.constant 0 : i32
    %0 = arith.cmpi eq, %arg1, %c0_i32 : i32
    %1 = arith.extui %0 : i1 to i32
    %c0_i32_0 = arith.constant 0 : i32
    %2 = arith.cmpi ne, %1, %c0_i32_0 : i32
    scf.if %2 {
      %c0_26 = arith.constant 0 : index
      %c0_27 = arith.constant 0 : index
      %c0_28 = arith.constant 0 : index
      %48 = vector.load %arg2[%c0_26, %c0_27, %c0_28] : memref<1x8x128xf32, #tpu.memory_space<vmem>>, vector<1x8x128xf32>
      %49 = vector.shape_cast %48 : vector<1x8x128xf32> to vector<8x128xf32>
      %50 = tpu.iota {dimensions = array<i32: 1>} : vector<1x128xi32>
      %c32_i32 = arith.constant 32 : i32
      %51 = vector.broadcast %c32_i32 : i32 to vector<1x128xi32>
      %52 = arith.cmpi slt, %50, %51 : vector<1x128xi32>
      %cst_29 = arith.constant dense<0.000000e+00> : vector<8xf32>
      %53 = vector.multi_reduction <add>, %49, %cst_29 [1] : vector<8x128xf32> to vector<8xf32>
      %54 = vector.shape_cast %53 : vector<8xf32> to vector<8x1xf32>
      %cst_30 = arith.constant 3.125000e-02 : f32
      %55 = vector.broadcast %cst_30 : f32 to vector<8x1xf32>
      %56 = arith.mulf %54, %55 : vector<8x1xf32>
      %57 = vector.broadcast %56 : vector<8x1xf32> to vector<8x128xf32>
      %58 = arith.subf %49, %57 : vector<8x128xf32>
      %cst_31 = arith.constant 0.000000e+00 : f32
      %59 = vector.shape_cast %52 : vector<1x128xi1> to vector<1x128xi1>
      %60 = vector.broadcast %59 : vector<1x128xi1> to vector<8x128xi1>
      %61 = vector.broadcast %cst_31 : f32 to vector<8x128xf32>
      %62 = arith.select %60, %58, %61 : vector<8x128xi1>, vector<8x128xf32>
      %63 = arith.mulf %62, %62 : vector<8x128xf32>
      %cst_32 = arith.constant dense<0.000000e+00> : vector<8xf32>
      %64 = vector.multi_reduction <add>, %63, %cst_32 [1] : vector<8x128xf32> to vector<8xf32>
      %65 = vector.shape_cast %64 : vector<8xf32> to vector<8x1xf32>
      %cst_33 = arith.constant 3.125000e-02 : f32
      %66 = vector.broadcast %cst_33 : f32 to vector<8x1xf32>
      %67 = arith.mulf %65, %66 : vector<8x1xf32>
      %cst_34 = arith.constant 9.99999974E-6 : f32
      %68 = vector.broadcast %cst_34 : f32 to vector<8x1xf32>
      %69 = arith.addf %67, %68 : vector<8x1xf32>
      %70 = math.rsqrt %69 : vector<8x1xf32>
      %71 = vector.broadcast %70 : vector<8x1xf32> to vector<8x128xf32>
      %72 = arith.mulf %62, %71 : vector<8x128xf32>
      %c0_35 = arith.constant 0 : index
      %c0_36 = arith.constant 0 : index
      %73 = vector.load %arg3[%c0_35, %c0_36] : memref<1x128xf32, #tpu.memory_space<vmem>>, vector<1x128xf32>
      %74 = vector.broadcast %73 : vector<1x128xf32> to vector<8x128xf32>
      %75 = arith.mulf %72, %74 : vector<8x128xf32>
      %c0_37 = arith.constant 0 : index
      %c0_38 = arith.constant 0 : index
      %76 = vector.load %arg4[%c0_37, %c0_38] : memref<1x128xf32, #tpu.memory_space<vmem>>, vector<1x128xf32>
      %77 = vector.broadcast %76 : vector<1x128xf32> to vector<8x128xf32>
      %78 = arith.addf %75, %77 : vector<8x128xf32>
      %c0_39 = arith.constant 0 : index
      %c0_40 = arith.constant 0 : index
      %79 = vector.load %arg5[%c0_39, %c0_40] : memref<128x1536xf32, #tpu.memory_space<vmem>>, vector<128x1536xf32>
      %cst_41 = arith.constant dense<0.000000e+00> : vector<8x1536xf32>
      %80 = tpu.matmul %78, %79, %cst_41 {dimension_numbers = #tpu.dot_dimension_numbers<[1], [0], [0], [1], [0, 0, 1, 1], [], []>} : vector<8x128xf32>, vector<128x1536xf32>, vector<8x1536xf32> -> vector<8x1536xf32>
      %c0_42 = arith.constant 0 : index
      %c0_43 = arith.constant 0 : index
      %81 = vector.load %arg6[%c0_42, %c0_43] : memref<1x1536xf32, #tpu.memory_space<vmem>>, vector<1x1536xf32>
      %82 = vector.broadcast %81 : vector<1x1536xf32> to vector<8x1536xf32>
      %83 = arith.addf %80, %82 : vector<8x1536xf32>
      %84 = vector.extract_strided_slice %83 {offsets = [0, 0], sizes = [8, 128], strides = [1, 1]} : vector<8x1536xf32> to vector<8x128xf32>
      %c0_44 = arith.constant 0 : index
      %c0_45 = arith.constant 0 : index
      %c0_46 = arith.constant 0 : index
      %85 = vector.load %arg10[%c0_44, %c0_45, %c0_46] : memref<4x8x128xf32, #tpu.memory_space<vmem>>, vector<1x8x128xf32>
      %86 = vector.shape_cast %85 : vector<1x8x128xf32> to vector<8x128xf32>
      %87 = vector.shape_cast %84 : vector<8x128xf32> to vector<1x8x128xf32>
      tpu.vector_store %arg10[%c0_44, %c0_45, %c0_46], %87 {strides = array<i32>} : memref<4x8x128xf32, #tpu.memory_space<vmem>>, vector<1x8x128xf32>,
      %88 = vector.extract_strided_slice %83 {offsets = [0, 512], sizes = [8, 128], strides = [1, 1]} : vector<8x1536xf32> to vector<8x128xf32>
      %c0_47 = arith.constant 0 : index
      %c0_48 = arith.constant 0 : index
      %c0_49 = arith.constant 0 : index
      %89 = vector.load %arg11[%c0_47, %c0_48, %c0_49] : memref<4x8x128xf32, #tpu.memory_space<vmem>>, vector<1x8x128xf32>
      %90 = vector.shape_cast %89 : vector<1x8x128xf32> to vector<8x128xf32>
      %91 = vector.shape_cast %88 : vector<8x128xf32> to vector<1x8x128xf32>
      tpu.vector_store %arg11[%c0_47, %c0_48, %c0_49], %91 {strides = array<i32>} : memref<4x8x128xf32, #tpu.memory_space<vmem>>, vector<1x8x128xf32>,
      %92 = vector.extract_strided_slice %83 {offsets = [0, 1024], sizes = [8, 128], strides = [1, 1]} : vector<8x1536xf32> to vector<8x128xf32>
      %c0_50 = arith.constant 0 : index
      %c0_51 = arith.constant 0 : index
      %c0_52 = arith.constant 0 : index
      %93 = vector.load %arg12[%c0_50, %c0_51, %c0_52] : memref<4x8x128xf32, #tpu.memory_space<vmem>>, vector<1x8x128xf32>
      %94 = vector.shape_cast %93 : vector<1x8x128xf32> to vector<8x128xf32>
      %95 = vector.shape_cast %92 : vector<8x128xf32> to vector<1x8x128xf32>
      tpu.vector_store %arg12[%c0_50, %c0_51, %c0_52], %95 {strides = array<i32>} : memref<4x8x128xf32, #tpu.memory_space<vmem>>, vector<1x8x128xf32>,
      %96 = vector.extract_strided_slice %83 {offsets = [0, 128], sizes = [8, 128], strides = [1, 1]} : vector<8x1536xf32> to vector<8x128xf32>
      %c1 = arith.constant 1 : index
      %c0_53 = arith.constant 0 : index
      %c0_54 = arith.constant 0 : index
      %97 = vector.load %arg10[%c1, %c0_53, %c0_54] : memref<4x8x128xf32, #tpu.memory_space<vmem>>, vector<1x8x128xf32>
      %98 = vector.shape_cast %97 : vector<1x8x128xf32> to vector<8x128xf32>
      %99 = vector.shape_cast %96 : vector<8x128xf32> to vector<1x8x128xf32>
      tpu.vector_store %arg10[%c1, %c0_53, %c0_54], %99 {strides = array<i32>} : memref<4x8x128xf32, #tpu.memory_space<vmem>>, vector<1x8x128xf32>,
      %100 = vector.extract_strided_slice %83 {offsets = [0, 640], sizes = [8, 128], strides = [1, 1]} : vector<8x1536xf32> to vector<8x128xf32>
      %c1_55 = arith.constant 1 : index
      %c0_56 = arith.constant 0 : index
      %c0_57 = arith.constant 0 : index
      %101 = vector.load %arg11[%c1_55, %c0_56, %c0_57] : memref<4x8x128xf32, #tpu.memory_space<vmem>>, vector<1x8x128xf32>
      %102 = vector.shape_cast %101 : vector<1x8x128xf32> to vector<8x128xf32>
      %103 = vector.shape_cast %100 : vector<8x128xf32> to vector<1x8x128xf32>
      tpu.vector_store %arg11[%c1_55, %c0_56, %c0_57], %103 {strides = array<i32>} : memref<4x8x128xf32, #tpu.memory_space<vmem>>, vector<1x8x128xf32>,
      %104 = vector.extract_strided_slice %83 {offsets = [0, 1152], sizes = [8, 128], strides = [1, 1]} : vector<8x1536xf32> to vector<8x128xf32>
      %c1_58 = arith.constant 1 : index
      %c0_59 = arith.constant 0 : index
      %c0_60 = arith.constant 0 : index
      %105 = vector.load %arg12[%c1_58, %c0_59, %c0_60] : memref<4x8x128xf32, #tpu.memory_space<vmem>>, vector<1x8x128xf32>
      %106 = vector.shape_cast %105 : vector<1x8x128xf32> to vector<8x128xf32>
      %107 = vector.shape_cast %104 : vector<8x128xf32> to vector<1x8x128xf32>
      tpu.vector_store %arg12[%c1_58, %c0_59, %c0_60], %107 {strides = array<i32>} : memref<4x8x128xf32, #tpu.memory_space<vmem>>, vector<1x8x128xf32>,
      %108 = vector.extract_strided_slice %83 {offsets = [0, 256], sizes = [8, 128], strides = [1, 1]} : vector<8x1536xf32> to vector<8x128xf32>
      %c2 = arith.constant 2 : index
      %c0_61 = arith.constant 0 : index
      %c0_62 = arith.constant 0 : index
      %109 = vector.load %arg10[%c2, %c0_61, %c0_62] : memref<4x8x128xf32, #tpu.memory_space<vmem>>, vector<1x8x128xf32>
      %110 = vector.shape_cast %109 : vector<1x8x128xf32> to vector<8x128xf32>
      %111 = vector.shape_cast %108 : vector<8x128xf32> to vector<1x8x128xf32>
      tpu.vector_store %arg10[%c2, %c0_61, %c0_62], %111 {strides = array<i32>} : memref<4x8x128xf32, #tpu.memory_space<vmem>>, vector<1x8x128xf32>,
      %112 = vector.extract_strided_slice %83 {offsets = [0, 768], sizes = [8, 128], strides = [1, 1]} : vector<8x1536xf32> to vector<8x128xf32>
      %c2_63 = arith.constant 2 : index
      %c0_64 = arith.constant 0 : index
      %c0_65 = arith.constant 0 : index
      %113 = vector.load %arg11[%c2_63, %c0_64, %c0_65] : memref<4x8x128xf32, #tpu.memory_space<vmem>>, vector<1x8x128xf32>
      %114 = vector.shape_cast %113 : vector<1x8x128xf32> to vector<8x128xf32>
      %115 = vector.shape_cast %112 : vector<8x128xf32> to vector<1x8x128xf32>
      tpu.vector_store %arg11[%c2_63, %c0_64, %c0_65], %115 {strides = array<i32>} : memref<4x8x128xf32, #tpu.memory_space<vmem>>, vector<1x8x128xf32>,
      %116 = vector.extract_strided_slice %83 {offsets = [0, 1280], sizes = [8, 128], strides = [1, 1]} : vector<8x1536xf32> to vector<8x128xf32>
      %c2_66 = arith.constant 2 : index
      %c0_67 = arith.constant 0 : index
      %c0_68 = arith.constant 0 : index
      %117 = vector.load %arg12[%c2_66, %c0_67, %c0_68] : memref<4x8x128xf32, #tpu.memory_space<vmem>>, vector<1x8x128xf32>
      %118 = vector.shape_cast %117 : vector<1x8x128xf32> to vector<8x128xf32>
      %119 = vector.shape_cast %116 : vector<8x128xf32> to vector<1x8x128xf32>
      tpu.vector_store %arg12[%c2_66, %c0_67, %c0_68], %119 {strides = array<i32>} : memref<4x8x128xf32, #tpu.memory_space<vmem>>, vector<1x8x128xf32>,
      %120 = vector.extract_strided_slice %83 {offsets = [0, 384], sizes = [8, 128], strides = [1, 1]} : vector<8x1536xf32> to vector<8x128xf32>
      %c3 = arith.constant 3 : index
      %c0_69 = arith.constant 0 : index
      %c0_70 = arith.constant 0 : index
      %121 = vector.load %arg10[%c3, %c0_69, %c0_70] : memref<4x8x128xf32, #tpu.memory_space<vmem>>, vector<1x8x128xf32>
      %122 = vector.shape_cast %121 : vector<1x8x128xf32> to vector<8x128xf32>
      %123 = vector.shape_cast %120 : vector<8x128xf32> to vector<1x8x128xf32>
      tpu.vector_store %arg10[%c3, %c0_69, %c0_70], %123 {strides = array<i32>} : memref<4x8x128xf32, #tpu.memory_space<vmem>>, vector<1x8x128xf32>,
      %124 = vector.extract_strided_slice %83 {offsets = [0, 896], sizes = [8, 128], strides = [1, 1]} : vector<8x1536xf32> to vector<8x128xf32>
      %c3_71 = arith.constant 3 : index
      %c0_72 = arith.constant 0 : index
      %c0_73 = arith.constant 0 : index
      %125 = vector.load %arg11[%c3_71, %c0_72, %c0_73] : memref<4x8x128xf32, #tpu.memory_space<vmem>>, vector<1x8x128xf32>
      %126 = vector.shape_cast %125 : vector<1x8x128xf32> to vector<8x128xf32>
      %127 = vector.shape_cast %124 : vector<8x128xf32> to vector<1x8x128xf32>
      tpu.vector_store %arg11[%c3_71, %c0_72, %c0_73], %127 {strides = array<i32>} : memref<4x8x128xf32, #tpu.memory_space<vmem>>, vector<1x8x128xf32>,
      %128 = vector.extract_strided_slice %83 {offsets = [0, 1408], sizes = [8, 128], strides = [1, 1]} : vector<8x1536xf32> to vector<8x128xf32>
      %c3_74 = arith.constant 3 : index
      %c0_75 = arith.constant 0 : index
      %c0_76 = arith.constant 0 : index
      %129 = vector.load %arg12[%c3_74, %c0_75, %c0_76] : memref<4x8x128xf32, #tpu.memory_space<vmem>>, vector<1x8x128xf32>
      %130 = vector.shape_cast %129 : vector<1x8x128xf32> to vector<8x128xf32>
      %131 = vector.shape_cast %128 : vector<8x128xf32> to vector<1x8x128xf32>
      tpu.vector_store %arg12[%c3_74, %c0_75, %c0_76], %131 {strides = array<i32>} : memref<4x8x128xf32, #tpu.memory_space<vmem>>, vector<1x8x128xf32>,
    } else {
    }
    %c8_i32 = arith.constant 8 : i32
    %3 = arith.muli %arg1, %c8_i32 : i32
    %4 = tpu.assume_multiple %3, 8 : i32
    %c0 = arith.constant 0 : index
    %5 = arith.index_cast %4 : i32 to index
    %c0_1 = arith.constant 0 : index
    %6 = vector.load %arg10[%c0, %5, %c0_1] : memref<4x8x128xf32, #tpu.memory_space<vmem>>, vector<4x8x128xf32>
    %c0_2 = arith.constant 0 : index
    %c0_3 = arith.constant 0 : index
    %c0_4 = arith.constant 0 : index
    %7 = vector.load %arg11[%c0_2, %c0_3, %c0_4] : memref<4x8x128xf32, #tpu.memory_space<vmem>>, vector<4x8x128xf32>
    %c0_5 = arith.constant 0 : index
    %c0_6 = arith.constant 0 : index
    %c0_7 = arith.constant 0 : index
    %8 = vector.load %arg12[%c0_5, %c0_6, %c0_7] : memref<4x8x128xf32, #tpu.memory_space<vmem>>, vector<4x8x128xf32>
    "tpu.trace_start"() <{level = 10 : i32, message = "hqd,hkd->hqk"}> : () -> ()
    %cst = arith.constant dense<0.000000e+00> : vector<4x8x8xf32>
    %9 = tpu.matmul %6, %7, %cst {dimension_numbers = #tpu.dot_dimension_numbers<[2], [2], [1], [1], [0, 0, 0, 1, 1, 1], [0], [0]>} : vector<4x8x128xf32>, vector<4x8x128xf32>, vector<4x8x8xf32> -> vector<4x8x8xf32>
    "tpu.trace_stop"() : () -> ()
    %cst_8 = arith.constant 0.176776692 : f32
    %10 = vector.broadcast %cst_8 : f32 to vector<4x8x8xf32>
    %11 = arith.mulf %9, %10 : vector<4x8x8xf32>
    %12 = tpu.iota {dimensions = array<i32: 1>} : vector<1x8x8xi32>
    %13 = vector.broadcast %4 : i32 to vector<1x8x8xi32>
    %14 = arith.addi %13, %12 : vector<1x8x8xi32>
    %15 = tpu.iota {dimensions = array<i32: 2>} : vector<1x8x8xi32>
    %16 = arith.cmpi sle, %15, %14 : vector<1x8x8xi32>
    %c8_i32_9 = arith.constant 8 : i32
    %17 = vector.broadcast %c8_i32_9 : i32 to vector<1x8x8xi32>
    %18 = arith.cmpi slt, %15, %17 : vector<1x8x8xi32>
    %19 = arith.andi %16, %18 : vector<1x8x8xi1>
    %cst_10 = arith.constant -1.000000e+30 : f32
    %20 = vector.shape_cast %19 : vector<1x8x8xi1> to vector<1x8x8xi1>
    %21 = vector.broadcast %20 : vector<1x8x8xi1> to vector<4x8x8xi1>
    %22 = vector.broadcast %cst_10 : f32 to vector<4x8x8xf32>
    %23 = arith.select %21, %11, %22 : vector<4x8x8xi1>, vector<4x8x8xf32>
    %cst_11 = arith.constant dense<0xFF800000> : vector<4x8xf32>
    %24 = vector.multi_reduction <maximumf>, %23, %cst_11 [2] : vector<4x8x8xf32> to vector<4x8xf32>
    %25 = vector.shape_cast %24 : vector<4x8xf32> to vector<4x8x1xf32>
    %26 = vector.broadcast %25 : vector<4x8x1xf32> to vector<4x8x8xf32>
    %27 = arith.subf %23, %26 : vector<4x8x8xf32>
    %28 = math.exp %27 : vector<4x8x8xf32>
    %cst_12 = arith.constant dense<0.000000e+00> : vector<4x8xf32>
    %29 = vector.multi_reduction <add>, %28, %cst_12 [2] : vector<4x8x8xf32> to vector<4x8xf32>
    %30 = vector.shape_cast %29 : vector<4x8xf32> to vector<4x8x1xf32>
    %31 = tpu.reciprocal %30 {approx = true} : vector<4x8x1xf32> -> vector<4x8x1xf32>
    %32 = vector.broadcast %31 : vector<4x8x1xf32> to vector<4x8x8xf32>
    %33 = arith.mulf %28, %32 : vector<4x8x8xf32>
    "tpu.trace_start"() <{level = 10 : i32, message = "hqk,hkd->hqd"}> : () -> ()
    %cst_13 = arith.constant dense<0.000000e+00> : vector<4x8x128xf32>
    %34 = tpu.matmul %33, %8, %cst_13 {dimension_numbers = #tpu.dot_dimension_numbers<[2], [1], [1], [2], [0, 0, 0, 1, 1, 2], [0], [0]>} : vector<4x8x8xf32>, vector<4x8x128xf32>, vector<4x8x128xf32> -> vector<4x8x128xf32>
    "tpu.trace_stop"() : () -> ()
    %c0_14 = arith.constant 0 : index
    %c0_15 = arith.constant 0 : index
    %c0_16 = arith.constant 0 : index
    %35 = vector.load %arg7[%c0_14, %c0_15, %c0_16] : memref<4x128x128xf32, #tpu.memory_space<vmem>>, vector<4x128x128xf32>
    "tpu.trace_start"() <{level = 10 : i32, message = "hqd,hdc->hqc"}> : () -> ()
    %cst_17 = arith.constant dense<0.000000e+00> : vector<4x8x128xf32>
    %36 = tpu.matmul %34, %35, %cst_17 {dimension_numbers = #tpu.dot_dimension_numbers<[2], [1], [1], [2], [0, 0, 0, 1, 1, 2], [0], [0]>} : vector<4x8x128xf32>, vector<4x128x128xf32>, vector<4x8x128xf32> -> vector<4x8x128xf32>
    "tpu.trace_stop"() : () -> ()
    %cst_18 = arith.constant dense<0.000000e+00> : vector<8x128xf32>
    %37 = vector.multi_reduction <add>, %36, %cst_18 [0] : vector<4x8x128xf32> to vector<8x128xf32>
    %c0_19 = arith.constant 0 : index
    %c0_20 = arith.constant 0 : index
    %38 = vector.load %arg8[%c0_19, %c0_20] : memref<1x128xf32, #tpu.memory_space<vmem>>, vector<1x128xf32>
    %39 = vector.broadcast %38 : vector<1x128xf32> to vector<8x128xf32>
    %40 = arith.addf %37, %39 : vector<8x128xf32>
    %c0_21 = arith.constant 0 : index
    %41 = arith.index_cast %4 : i32 to index
    %c0_22 = arith.constant 0 : index
    %42 = vector.load %arg2[%c0_21, %41, %c0_22] : memref<1x8x128xf32, #tpu.memory_space<vmem>>, vector<1x8x128xf32>
    %43 = vector.shape_cast %42 : vector<1x8x128xf32> to vector<8x128xf32>
    %44 = arith.addf %43, %40 : vector<8x128xf32>
    %c0_23 = arith.constant 0 : index
    %c0_24 = arith.constant 0 : index
    %c0_25 = arith.constant 0 : index
    %45 = vector.load %arg9[%c0_23, %c0_24, %c0_25] : memref<1x8x128xf32, #tpu.memory_space<vmem>>, vector<1x8x128xf32>
    %46 = vector.shape_cast %45 : vector<1x8x128xf32> to vector<8x128xf32>
    %47 = vector.shape_cast %44 : vector<8x128xf32> to vector<1x8x128xf32>
    tpu.vector_store %arg9[%c0_23, %c0_24, %c0_25], %47 {strides = array<i32>} : memref<1x8x128xf32, #tpu.memory_space<vmem>>, vector<1x8x128xf32>,
    return
  }
  func.func @transform_0(%arg0: i32, %arg1: i32) -> (i32, i32, i32) {
    %c0_i32 = arith.constant 0 : i32
    %c0_i32_0 = arith.constant 0 : i32
    %c0_i32_1 = arith.constant 0 : i32
    return %arg0, %c0_i32, %c0_i32_0 : i32, i32, i32
  }
  func.func @transform_1(%arg0: i32, %arg1: i32) -> (i32, i32) {
    %c0_i32 = arith.constant 0 : i32
    %c0_i32_0 = arith.constant 0 : i32
    %c0_i32_1 = arith.constant 0 : i32
    return %c0_i32, %c0_i32_0 : i32, i32
  }
  func.func @transform_2(%arg0: i32, %arg1: i32) -> (i32, i32) {
    %c0_i32 = arith.constant 0 : i32
    %c0_i32_0 = arith.constant 0 : i32
    %c0_i32_1 = arith.constant 0 : i32
    return %c0_i32, %c0_i32_0 : i32, i32
  }
  func.func @transform_3(%arg0: i32, %arg1: i32) -> (i32, i32) {
    %c0_i32 = arith.constant 0 : i32
    %c0_i32_0 = arith.constant 0 : i32
    %c0_i32_1 = arith.constant 0 : i32
    return %c0_i32, %c0_i32_0 : i32, i32
  }
  func.func @transform_4(%arg0: i32, %arg1: i32) -> (i32, i32) {
    %c0_i32 = arith.constant 0 : i32
    %c0_i32_0 = arith.constant 0 : i32
    %c0_i32_1 = arith.constant 0 : i32
    return %c0_i32, %c0_i32_0 : i32, i32
  }
  func.func @transform_5(%arg0: i32, %arg1: i32) -> (i32, i32, i32) {
    %c0_i32 = arith.constant 0 : i32
    %c0_i32_0 = arith.constant 0 : i32
    %c0_i32_1 = arith.constant 0 : i32
    %c0_i32_2 = arith.constant 0 : i32
    return %c0_i32, %c0_i32_0, %c0_i32_1 : i32, i32, i32
  }
  func.func @transform_6(%arg0: i32, %arg1: i32) -> (i32, i32) {
    %c0_i32 = arith.constant 0 : i32
    %c0_i32_0 = arith.constant 0 : i32
    %c0_i32_1 = arith.constant 0 : i32
    return %c0_i32, %c0_i32_0 : i32, i32
  }
  func.func @transform_7(%arg0: i32, %arg1: i32) -> (i32, i32, i32) {
    %c0_i32 = arith.constant 0 : i32
    %c0_i32_0 = arith.constant 0 : i32
    return %arg0, %arg1, %c0_i32 : i32, i32, i32
  }
}

</mosaic_0001>

<bundles_post_ra>
// kernel: block_forward.3
= control target key start
LH: loop header
LB: loop body
LE: loop exit
PB: predicated region body
PF: predicated region fallthrough
CT: control target
= control target key end

     0   :  { %12 = vsyncpa [#allocation5], 0  ;;  %s420_s0 = inlined_call_operand.vmem [shape: f32[8,128], index: 0, kind: input, shape index: {}]   ;;  %s421_s1 = inlined_call_operand.vmem [shape: f32[1,128], index: 1, kind: input, shape index: {}]   ;;  %s422_s2 = inlined_call_operand.vmem [shape: f32[1,128], index: 2, kind: input, shape index: {}]   ;;  %s423_s3 = inlined_call_operand.hbm [shape: f32[128,128], index: 3, kind: input, shape index: {}]   ;;  %s424_s4 = inlined_call_operand.vmem [shape: f32[1,128], index: 4, kind: input, shape index: {}]   ;;  %s425_s5 = inlined_call_operand.hbm [shape: f32[128,128], index: 5, kind: input, shape index: {}]   ;;  %s426_s6 = inlined_call_operand.vmem [shape: f32[1,128], index: 6, kind: input, shape index: {}]   ;;  %s427_s7 = inlined_call_operand.hbm [shape: f32[8,128], index: 7, kind: output, shape index: {}]  }
   0x1   :  { %13 = vsyncpa [#allocation8], 0 }
   0x2   :  { %14 = vsyncpa [#allocation6], 0  ;;  %s25_s26 = sshll.u32 %s423_s3, 4  ;;  %s346_s27 = smov [#allocation4]   ;;  %s26_s26 = int_to_ptr.hbm [resolvable:$true] %s25_s26 }
   0x3   :  { %s27_s28 = sshll.u32 %s346_s27, 4  ;;  %s40_s8 = sshll.u32 %s425_s5, 4  ;;  %s28_s28 = int_to_ptr.vmem [resolvable:$true] %s27_s28  ;;  %s41_s8 = int_to_ptr.hbm [resolvable:$true] %s40_s8 }
   0x4   :  { %s347_s9 = smov 128   ;;  %s348_s10 = smov 8  }
   0x5   :  { %33 = dma.hbm_to_vmem [thread:$0]  %s26_s26, 2048, %s28_s28, [#allocation5], %s347_s9, %s347_s9, %s348_s10  }
   0x6   :  { %s349_s11 = smov [#allocation7]  }
   0x7   :  { %s42_s12 = sshll.u32 %s349_s11, 4  ;;  %s43_s12 = int_to_ptr.vmem [resolvable:$true] %s42_s12 }
   0x8   :  { %48 = dma.hbm_to_vmem [thread:$0]  %s41_s8, 2048, %s43_s12, [#allocation8], %s347_s9, %s347_s9, %s348_s10  }
   0x9   :  { %340 = dma.done.wait [#allocation5], 2048  }
   0xa   :  { %341 = vsyncadd [#allocation5], 4294965248 }
   0xb   :  { %342 = dma.done.wait [#allocation8], 2048  }
   0xc   :  { %343 = vsyncadd [#allocation8], 4294965248  ;;  %v400_v0 = vld [vmem:[%s420_s0] sm:$0xff]  ;;  %v118_v1 = vld [vmem:[#allocation4 + $0x78] sm:$0xff]  ;;  %v64_v3 = vlaneseq  ;;  %s243_s21 = sshll.u32 %s427_s7, 4  ;;  %s244_s21 = int_to_ptr.hbm [resolvable:$true] %s243_s21 }
   0xd   :  { %67 = vadd.xlane.f32.xlu0 %v400_v0  ;;  %v117_v2 = vld [vmem:[#allocation4 + $0x70] sm:$0xff]  ;;  %123 = vmatpush.msra.mxu0 %v118_v1  ;;  %v116_v10 = vld [vmem:[#allocation4 + $0x68] sm:$0xff]  ;;  %v115_v11 = vld [vmem:[#allocation4 + $0x60] sm:$0xff] }
   0xe   :  { %v65_v4 = vand.u32 127, %v64_v3  ;;  %v114_v12 = vld [vmem:[#allocation4 + $0x58] sm:$0xff]  ;;  %v113_v13 = vld [vmem:[#allocation4 + $0x50] sm:$0xff]  ;;  %v112_v14 = vld [vmem:[#allocation4 + $0x48] sm:$0xff] }
   0xf   :  { %124 = vmatpush.msra.mxu0 %v117_v2  ;;  %v111_v15 = vld [vmem:[#allocation4 + $0x40] sm:$0xff]  ;;  %v110_v16 = vld [vmem:[#allocation4 + $0x38] sm:$0xff]  ;;  %v109_v17 = vld [vmem:[#allocation4 + $0x30] sm:$0xff] }
  0x10   :  { %vm66_vm0 = vcmp.lt.s32.totalorder %v65_v4, 32  ;;  %v108_v18 = vld [vmem:[#allocation4 + $0x28] sm:$0xff]  ;;  %v107_v19 = vld [vmem:[#allocation4 + $0x20] sm:$0xff]  ;;  %v106_v20 = vld [vmem:[#allocation4 + $0x18] sm:$0xff] }
  0x11   :  { %125 = vmatpush.msra.mxu0 %v116_v10  ;;  %v105_v21 = vld [vmem:[#allocation4 + $0x10] sm:$0xff]  ;;  %v104_v22 = vld [vmem:[#allocation4 + $0x8] sm:$0xff]  ;;  %v103_v23 = vld [vmem:[#allocation4] sm:$0xff] }
  0x12   :  { %v260_v33 = vld [vmem:[%s421_s1] ss:$0 sm:$0xff]  ;;  %v203_v39 = vld [vmem:[#allocation7 + $0x78] sm:$0xff]  ;;  %v202_v40 = vld [vmem:[#allocation7 + $0x70] sm:$0xff] }
  0x13   :  { %126 = vmatpush.msra.mxu0 %v115_v11  ;;  %v261_v36 = vld [vmem:[%s422_s2] ss:$0 sm:$0xff]  ;;  %204 = vmatpush.msra.mxu1 %v203_v39  ;;  %v201_v41 = vld [vmem:[#allocation7 + $0x68] sm:$0xff]  ;;  %v199_v44 = vld [vmem:[#allocation7 + $0x58] sm:$0xff] }
  0x14   :  { %v200_v42 = vld [vmem:[#allocation7 + $0x60] sm:$0xff]  ;;  %v198_v45 = vld [vmem:[#allocation7 + $0x50] sm:$0xff]  ;;  %v197_v47 = vld [vmem:[#allocation7 + $0x48] sm:$0xff] }
  0x15   :  { %127 = vmatpush.msra.mxu0 %v114_v12  ;;  %205 = vmatpush.msra.mxu1 %v202_v40  ;;  %v262_v43 = vld [vmem:[%s424_s4] ss:$0 sm:$0xff]  ;;  %v195_v51 = vld [vmem:[#allocation7 + $0x38] sm:$0xff]  ;;  %v194_v53 = vld [vmem:[#allocation7 + $0x30] sm:$0xff]  ;;  %s350_s4 = smov [#allocation9]  }
  0x16   :  { %v196_v49 = vld [vmem:[#allocation7 + $0x40] sm:$0xff]  ;;  %v193_v55 = vld [vmem:[#allocation7 + $0x28] sm:$0xff]  ;;  %v191_v61 = vld [vmem:[#allocation7 + $0x18] sm:$0xff]  ;;  %s241_s18 = sshll.u32 %s350_s4, 4  ;;  %s242_s18 = int_to_ptr.vmem [resolvable:$true] %s241_s18 }
  0x17   :  { %128 = vmatpush.msra.mxu0 %v113_v13  ;;  %206 = vmatpush.msra.mxu1 %v201_v41  ;;  %v192_v58 = vld [vmem:[#allocation7 + $0x20] sm:$0xff]  ;;  %v190_v1 = vld [vmem:[#allocation7 + $0x10] sm:$0xff]  ;;  %v189_v4 = vld [vmem:[#allocation7 + $0x8] sm:$0xff] }
  0x19   :  { %129 = vmatpush.msra.mxu0 %v112_v14  ;;  %207 = vmatpush.msra.mxu1 %v200_v42 }
  0x1b   :  { %130 = vmatpush.msra.mxu0 %v111_v15  ;;  %208 = vmatpush.msra.mxu1 %v199_v44 }
  0x1d   :  { %131 = vmatpush.msra.mxu0 %v110_v16  ;;  %209 = vmatpush.msra.mxu1 %v198_v45 }
  0x1f   :  { %132 = vmatpush.msra.mxu0 %v109_v17  ;;  %210 = vmatpush.msra.mxu1 %v197_v47 }
  0x21   :  { %133 = vmatpush.msra.mxu0 %v108_v18  ;;  %211 = vmatpush.msra.mxu1 %v196_v49 }
  0x23   :  { %134 = vmatpush.msra.mxu0 %v107_v19  ;;  %212 = vmatpush.msra.mxu1 %v195_v51 }
  0x25   :  { %135 = vmatpush.msra.mxu0 %v106_v20  ;;  %213 = vmatpush.msra.mxu1 %v194_v53 }
  0x27   :  { %136 = vmatpush.msra.mxu0 %v105_v21  ;;  %214 = vmatpush.msra.mxu1 %v193_v55 }
  0x29   :  { %137 = vmatpush.msra.mxu0 %v104_v22  ;;  %215 = vmatpush.msra.mxu1 %v192_v58 }
  0x2b   :  { %138 = vmatpush.msra.mxu0 %v103_v23  ;;  %216 = vmatpush.msra.mxu1 %v191_v61 }
  0x2d   :  { %217 = vmatpush.msra.mxu1 %v190_v1 }
  0x2f   :  { %218 = vmatpush.msra.mxu1 %v189_v4 }
  0x80   :  { %v68_v5 = vpop.xlane.xlu0 %67 }
  0x81   :  { %v69_v6 = vmul.f32 0.03125, %v68_v5 }
  0x83   :  { %v70_v7 = vsub.f32 %v400_v0, %v69_v6  ;;  %v188_v6 = vld [vmem:[#allocation7] sm:$0xff] }
  0x84   :  { %219 = vmatpush.msra.mxu1 %v188_v6 }
  0x85   :  { %v73_v8 = vsel %vm66_vm0, %v70_v7, 0.0 }
  0x86   :  { %v74_v9 = vmul.f32 %v73_v8, %v73_v8 }
  0x88   :  { %75 = vadd.xlane.f32.xlu0 %v74_v9 }
  0xfb   :  { %v76_v24 = vpop.xlane.xlu0 %75 }
  0xfc   :  { %v77_v25 = vmul.f32 0.03125, %v76_v24 }
  0xfe   :  { %v78_v26 = vadd.f32 1e-05, %v77_v25 }
 0x100   :  { %264 = vrsqrt.f32 %v78_v26  ;;  %vm85_vm2 = vweird.f32 %v78_v26 }
 0x106   :  { %v265_v27 = vpop.eup %264 }
 0x107   :  { %v80_v28 = vmul.f32 %v265_v27, %v78_v26  ;;  %vm86_vm1 = vweird.f32 %v265_v27 }
 0x108   :  { %vm87_vm3 = vmor %vm85_vm2, %vm86_vm1 }
 0x109   :  { %v81_v29 = vmul.f32 %v265_v27, %v80_v28 }
 0x10b   :  { %v82_v30 = vmul.f32 0.5, %v81_v29 }
 0x10d   :  { %v83_v31 = vsub.f32 1.5, %v82_v30 }
 0x10f   :  { %v84_v32 = vmul.f32 %v265_v27, %v83_v31 }
 0x111   :  { %v88_v34 = vsel %vm87_vm3, %v265_v27, %v84_v32 }
 0x112   :  { %v89_v35 = vmul.f32 %v88_v34, %v73_v8  ;;  %v263_v34 = vld [vmem:[%s426_s6] ss:$0 sm:$0xff] }
 0x114   :  { %v94_v37 = vmul.f32 %v260_v33, %v89_v35 }
 0x116   :  { %v99_v38 = vadd.f32 %v261_v36, %v94_v37 }
 0x118   :  { %139 = vmatmul.f32.vlgmr.msra.gmra.mxu0 %v99_v38 }
 0x195   :  { %v140_v46 = vpop.f32.mrf.mxu0 }
 0x196   :  { %v141_v48 = vadd.f32 %v262_v43, %v140_v46 }
 0x198   :  { %v144_v50 = vmul.f32 0.70710677, %v141_v48  ;;  %v143_v31 = vmul.f32 0.5, %v141_v48 }
 0x19a   :  { %v145_v52 = vmul.f32 %v144_v50, %v144_v50 }
 0x19c   :  { %v146_v54 = vmin.f32 %v145_v52, 16.0 }
 0x19e   :  { %v147_v56 = vmul.f32 2.1237322e-06, %v146_v54  ;;  %v158_v57 = vmul.f32 3.8918573e-05, %v146_v54 }
 0x1a0   :  { %v148_v59 = vadd.f32 0.00028619796, %v147_v56  ;;  %v159_v60 = vadd.f32 0.001143296, %v158_v57 }
 0x1a2   :  { %v149_v62 = vmul.f32 %v148_v59, %v146_v54  ;;  %v160_v63 = vmul.f32 %v159_v60, %v146_v54 }
 0x1a4   :  { %v161_v2 = vadd.f32 0.014752088, %v160_v63  ;;  %v150_v3 = vadd.f32 0.0036580483, %v149_v62 }
 0x1a6   :  { %v162_v5 = vmul.f32 %v161_v2, %v146_v54  ;;  %v151_v8 = vmul.f32 %v150_v3, %v146_v54 }
 0x1a8   :  { %v163_v7 = vadd.f32 0.112945676, %v162_v5  ;;  %v152_v11 = vadd.f32 0.05243302, %v151_v8 }
 0x1aa   :  { %v164_v9 = vmul.f32 %v163_v7, %v146_v54  ;;  %v153_v14 = vmul.f32 %v152_v11, %v146_v54 }
 0x1ac   :  { %v165_v10 = vadd.f32 0.4994258, %v164_v9  ;;  %v154_v15 = vadd.f32 0.18741608, %v153_v14 }
 0x1ae   :  { %v166_v12 = vmul.f32 %v165_v10, %v146_v54  ;;  %v155_v17 = vmul.f32 %v154_v15, %v146_v54 }
 0x1b0   :  { %v167_v13 = vadd.f32 1.0, %v166_v12  ;;  %v156_v21 = vadd.f32 1.1283791, %v155_v17 }
 0x1b2   :  { %266 = vrcp.f32 %v167_v13  ;;  %v179_v20 = vand.u32 2147483648, %v167_v13  ;;  %v177_v23 = vand.u32 2147483647, %v167_v13  ;;  %vm173_vm5 = vweird.f32 %v167_v13 }
 0x1b3   :  { %v157_v26 = vmul.f32 %v156_v21, %v144_v50 }
 0x1b4   :  { %v180_v25 = vor.u32 1.1754944e-38, %v179_v20  ;;  %vm178_vm7 = vcmp.eq.f32.partialorder %v177_v23, 8.507059e+37 }
 0x1b8   :  { %v267_v16 = vpop.eup %266 }
 0x1b9   :  { %v169_v18 = vmul.f32 %v267_v16, %v167_v13  ;;  %vm174_vm4 = vweird.f32 %v267_v16 }
 0x1ba   :  { %vm175_vm6 = vmor %vm173_vm5, %vm174_vm4 }
 0x1bb   :  { %v170_v19 = vsub.f32 1.0, %v169_v18 }
 0x1bd   :  { %v171_v22 = vmul.f32 %v267_v16, %v170_v19 }
 0x1bf   :  { %v172_v24 = vadd.f32 %v267_v16, %v171_v22 }
 0x1c1   :  { %v176_v27 = vsel %vm175_vm6, %v267_v16, %v172_v24 }
 0x1c2   :  { %v181_v28 = vsel %vm178_vm7, %v180_v25, %v176_v27 }
 0x1c3   :  { %v182_v29 = vmul.f32 %v181_v28, %v157_v26 }
 0x1c5   :  { %v254_v30 = vclamps-f32 %v182_v29, 1.0 }
 0x1c7   :  { %v185_v32 = vadd.f32 1.0, %v254_v30 }
 0x1c9   :  { %v186_v33 = vmul.f32 %v185_v32, %v143_v31 }
 0x1cb   :  { %220 = vmatmul.f32.vlgmr.msra.gmra.mxu1 %v186_v33 }
 0x248   :  { %v221_v35 = vpop.f32.mrf.mxu1 }
 0x249   :  { %v224_v36 = vadd.f32 %v221_v35, %v400_v0 }
 0x24b   :  { %v234_v37 = vadd.f32 %v263_v34, %v224_v36 }
 0x24d   :  { %235 = vst [vmem:[#allocation9] sm:$0xff] %v234_v37 }
 0x24e   :  { %246 = dma.vmem_to_hbm [thread:$0]  %s242_s18, 128, %s244_s21, [#allocation6]  }
 0x24f   :  { %344 = dma.done.wait [#allocation6], 128  }
 0x250   :  { %345 = vsyncadd [#allocation6], 4294967168 }
 0x251   :  { %251 = vsyncpa [#allocation5], 1 }
 0x252   :  { %252 = vsyncpa [#allocation8], 1 }
 0x253   :  { %253 = vsyncpa [#allocation6], 1 }

// kernel: block_forward.2
= control target key start
LH: loop header
LB: loop body
LE: loop exit
PB: predicated region body
PF: predicated region fallthrough
CT: control target
= control target key end

     0   :  { %12 = vsyncpa [#allocation6], 0  ;;  %s1738_s0 = inlined_call_operand.vmem [shape: f32[2,8,128], index: 0, kind: input, shape index: {}]   ;;  %s1739_s1 = inlined_call_operand.vmem [shape: f32[1,128], index: 1, kind: input, shape index: {}]   ;;  %s1740_s2 = inlined_call_operand.vmem [shape: f32[1,128], index: 2, kind: input, shape index: {}]   ;;  %s1741_s3 = inlined_call_operand.hbm [shape: f32[128,1536], index: 3, kind: input, shape index: {}]   ;;  %s1742_s4 = inlined_call_operand.vmem [shape: f32[1,1536], index: 4, kind: input, shape index: {}]   ;;  %s1743_s5 = inlined_call_operand.hbm [shape: f32[4,128,128], index: 5, kind: input, shape index: {}]   ;;  %s1744_s6 = inlined_call_operand.vmem [shape: f32[1,128], index: 6, kind: input, shape index: {}]   ;;  %s1745_s7 = inlined_call_operand.vmem [shape: f32[2,8,128], index: 7, kind: output, shape index: {}]  }
   0x1   :  { %13 = vsyncpa [#allocation8], 0  ;;  %s1580_s24 = smov 0   ;;  %s1582_s25 = smov 0  }
   0x2   :  { %s1584_s26 = smov 0  }
   0x3 LB: > { %s1354_s27 = sadd.s32 4294967295, %s1532_s26   ;;  %s31_s28 = sadd.s32 1, %s1528_s25  ;;  %s1532_s26 = sphi %s1584_s26, %s19_s26   ;;  %s1528_s25 = sphi %s1582_s25, %s1751_s25   ;;  %s1524_s24 = sphi %s1580_s24, %s1750_s24  }
   0x4   : > { %p33_p0 = scmp.ge.s32.totalorder %s31_s28, 2  ;;  %p1356_p1 = scmp.ge.s32.totalorder %s1532_s26, 1 }
   0x5   : > { %p216_p2 = scmp.lt.s32.totalorder %s1532_s26, 3  ;;  %p1605_p4 = scmp.eq.s32.totalorder %s1354_s27, 0 }
   0x6   : > { %s1753_s28 = smov (%p33_p0, %s31_s28), 0  ;;  %s233_s10 = sshll.u32 %s1741_s3, 4  ;;  %s234_s10 = int_to_ptr.hbm [resolvable:$true] %s233_s10 }
   0x7   : > { %p1601_p3 = pnand %p1356_p1, %p216_p2  ;;  %s1534_s11 = smov [#allocation5]  }
   0x8   : > { %s235_s12 = sshll.u32 %s1534_s11, 4  ;;  %s250_s15 = sshll.u32 %s1743_s5, 4  ;;  %s236_s12 = int_to_ptr.vmem [resolvable:$true] %s235_s12  ;;  %s251_s15 = int_to_ptr.hbm [resolvable:$true] %s250_s15 }
   0x9   : > { %p1379_p5 = pneg %p1601_p3  ;;  %s1535_s16 = smov 1536  }
   0xa   : > { %s1536_s17 = smov 96   ;;  %s1537_s18 = smov [#allocation7]  }
   0xb   : > { %p1380_p6 = pnand %p1605_p4, %p1379_p5  ;;  %s252_s19 = sshll.u32 %s1537_s18, 4  ;;  %s253_s19 = int_to_ptr.vmem [resolvable:$true] %s252_s19 }
   0xc   : > { %s1538_s20 = smov 128   ;;  %s1539_s21 = smov 8  }
   0xd   : > { %1382 = dma.hbm_to_vmem [thread:$0]  (!%p1380_p6), %s234_s10, 24576, %s236_s12, [#allocation6], %s1535_s16, %s1535_s16, %s1536_s17  }
   0xe   : > { %1385 = dma.hbm_to_vmem [thread:$0]  (!%p1380_p6), %s251_s15, 8192, %s253_s19, [#allocation8], %s1538_s20, %s1538_s20, %s1539_s21  }
   0xf   : > { %278 = sbr.rel (%p1601_p3) target bundleno = 1112 (0x458), region = 48 }
  0x14   : > { %1515 = dma.done.wait (%p1605_p4), [#allocation6], 24576  }
  0x15   : > { %1517 = vsyncadd (%p1605_p4), [#allocation6], 4294942720 }
  0x16   : > { %1519 = dma.done.wait (%p1605_p4), [#allocation8], 8192  }
  0x17   : > { %1521 = vsyncadd (%p1605_p4), [#allocation8], 4294959104  ;;  %p317_p7 = scmp.lt.s32.totalorder %s1524_s24, 1  ;;  %v549_v1 = vld [vmem:[#allocation5 + $0x5a0] sm:$0xff]  ;;  %v550_v2 = vld [vmem:[#allocation5 + $0x5a8] sm:$0xff]  ;;  %v333_v41 = vlaneseq  ;;  %vm963_vm7 = vcmask 64512  }
  0x18   : > { %v551_v3 = vld [vmem:[#allocation5 + $0x5b0] sm:$0xff]  ;;  %589 = vmatpush.msra.mxu0 %v549_v1  ;;  %609 = vmatpush.msra.mxu1 %v550_v2  ;;  %v552_v4 = vld [vmem:[#allocation5 + $0x5b8] sm:$0xff]  ;;  %v537_v5 = vld [vmem:[#allocation5 + $0x540] sm:$0xff] }
  0x19   : > { %s1755_s24 = smov (!%p317_p7, %s1524_s24), 1  ;;  %v538_v6 = vld [vmem:[#allocation5 + $0x548] sm:$0xff]  ;;  %629 = vmatpush.msra.mxu2 %v551_v3  ;;  %649 = vmatpush.msra.mxu3 %v552_v4  ;;  %v539_v7 = vld [vmem:[#allocation5 + $0x550] sm:$0xff]  ;;  %v540_v8 = vld [vmem:[#allocation5 + $0x558] sm:$0xff]  ;;  %v1646_v50 = vand.u32 127, %v333_v41 }
  0x1a   : > { %s1363_s22 = sshll.u32 %s1755_s24, 3  ;;  %v525_v9 = vld [vmem:[#allocation5 + $0x4e0] sm:$0xff]  ;;  %590 = vmatpush.msra.mxu0 %v537_v5  ;;  %610 = vmatpush.msra.mxu1 %v538_v6  ;;  %v526_v10 = vld [vmem:[#allocation5 + $0x4e8] sm:$0xff]  ;;  %v527_v11 = vld [vmem:[#allocation5 + $0x4f0] sm:$0xff] }
  0x1b   : > { %s1639_s29 = scalar_lea.vmem %s1738_s0, %s1363_s22  ;;  %v528_v12 = vld [vmem:[#allocation5 + $0x4f8] sm:$0xff]  ;;  %630 = vmatpush.msra.mxu2 %v539_v7  ;;  %650 = vmatpush.msra.mxu3 %v540_v8  ;;  %v513_v13 = vld [vmem:[#allocation5 + $0x480] sm:$0xff]  ;;  %v514_v14 = vld [vmem:[#allocation5 + $0x488] sm:$0xff]  ;;  %vm335_vm0 = vcmp.lt.s32.totalorder %v1646_v50, 32  ;;  %vm955_vm5 = vcmp.lt.s32.totalorder %v1646_v50, 8  ;;  %s327_s19 = scalar_lea.vmem %s1745_s7, %s1363_s22 }
  0x1c   : > { %v1642_v0 = vld [vmem:[%s1639_s29] sm:$0xff]  ;;  %591 = vmatpush.msra.mxu0 %v525_v9  ;;  %611 = vmatpush.msra.mxu1 %v526_v10  ;;  %v515_v15 = vld [vmem:[#allocation5 + $0x490] sm:$0xff]  ;;  %v516_v16 = vld [vmem:[#allocation5 + $0x498] sm:$0xff] }
  0x1d   : > { %336 = vadd.xlane.f32.xlu0 %v1642_v0  ;;  %631 = vmatpush.msra.mxu2 %v527_v11  ;;  %v501_v17 = vld [vmem:[#allocation5 + $0x420] sm:$0xff]  ;;  %v502_v18 = vld [vmem:[#allocation5 + $0x428] sm:$0xff]  ;;  %v503_v19 = vld [vmem:[#allocation5 + $0x430] sm:$0xff] }
  0x1e   : > { %651 = vmatpush.msra.mxu3 %v528_v12  ;;  %592 = vmatpush.msra.mxu0 %v513_v13  ;;  %v504_v20 = vld [vmem:[#allocation5 + $0x438] sm:$0xff]  ;;  %v489_v21 = vld [vmem:[#allocation5 + $0x3c0] sm:$0xff]  ;;  %v490_v22 = vld [vmem:[#allocation5 + $0x3c8] sm:$0xff] }
  0x1f   : > { %612 = vmatpush.msra.mxu1 %v514_v14  ;;  %632 = vmatpush.msra.mxu2 %v515_v15  ;;  %v491_v23 = vld [vmem:[#allocation5 + $0x3d0] sm:$0xff]  ;;  %v492_v24 = vld [vmem:[#allocation5 + $0x3d8] sm:$0xff]  ;;  %v477_v25 = vld [vmem:[#allocation5 + $0x360] sm:$0xff] }
  0x20   : > { %652 = vmatpush.msra.mxu3 %v516_v16  ;;  %593 = vmatpush.msra.mxu0 %v501_v17  ;;  %v478_v26 = vld [vmem:[#allocation5 + $0x368] sm:$0xff]  ;;  %v479_v27 = vld [vmem:[#allocation5 + $0x370] sm:$0xff]  ;;  %v480_v28 = vld [vmem:[#allocation5 + $0x378] sm:$0xff] }
  0x21   : > { %613 = vmatpush.msra.mxu1 %v502_v18  ;;  %633 = vmatpush.msra.mxu2 %v503_v19  ;;  %v465_v29 = vld [vmem:[#allocation5 + $0x300] sm:$0xff]  ;;  %v466_v30 = vld [vmem:[#allocation5 + $0x308] sm:$0xff]  ;;  %v467_v31 = vld [vmem:[#allocation5 + $0x310] sm:$0xff] }
  0x22   : > { %653 = vmatpush.msra.mxu3 %v504_v20  ;;  %594 = vmatpush.msra.mxu0 %v489_v21  ;;  %v468_v32 = vld [vmem:[#allocation5 + $0x318] sm:$0xff]  ;;  %v453_v33 = vld [vmem:[#allocation5 + $0x2a0] sm:$0xff]  ;;  %v454_v34 = vld [vmem:[#allocation5 + $0x2a8] sm:$0xff] }
  0x23   : > { %614 = vmatpush.msra.mxu1 %v490_v22  ;;  %634 = vmatpush.msra.mxu2 %v491_v23  ;;  %v455_v35 = vld [vmem:[#allocation5 + $0x2b0] sm:$0xff]  ;;  %v456_v36 = vld [vmem:[#allocation5 + $0x2b8] sm:$0xff]  ;;  %v441_v37 = vld [vmem:[#allocation5 + $0x240] sm:$0xff] }
  0x24   : > { %654 = vmatpush.msra.mxu3 %v492_v24  ;;  %595 = vmatpush.msra.mxu0 %v477_v25  ;;  %v442_v38 = vld [vmem:[#allocation5 + $0x248] sm:$0xff]  ;;  %v443_v39 = vld [vmem:[#allocation5 + $0x250] sm:$0xff]  ;;  %v444_v40 = vld [vmem:[#allocation5 + $0x258] sm:$0xff] }
  0x25   : > { %615 = vmatpush.msra.mxu1 %v478_v26  ;;  %635 = vmatpush.msra.mxu2 %v479_v27  ;;  %v429_v42 = vld [vmem:[#allocation5 + $0x1e0] sm:$0xff]  ;;  %v430_v43 = vld [vmem:[#allocation5 + $0x1e8] sm:$0xff]  ;;  %v431_v44 = vld [vmem:[#allocation5 + $0x1f0] sm:$0xff] }
  0x26   : > { %655 = vmatpush.msra.mxu3 %v480_v28  ;;  %596 = vmatpush.msra.mxu0 %v465_v29  ;;  %v432_v45 = vld [vmem:[#allocation5 + $0x1f8] sm:$0xff]  ;;  %v417_v46 = vld [vmem:[#allocation5 + $0x180] sm:$0xff]  ;;  %v418_v47 = vld [vmem:[#allocation5 + $0x188] sm:$0xff] }
  0x27   : > { %616 = vmatpush.msra.mxu1 %v466_v30  ;;  %636 = vmatpush.msra.mxu2 %v467_v31  ;;  %v419_v48 = vld [vmem:[#allocation5 + $0x190] sm:$0xff]  ;;  %v420_v49 = vld [vmem:[#allocation5 + $0x198] sm:$0xff]  ;;  %v405_v51 = vld [vmem:[#allocation5 + $0x120] sm:$0xff] }
  0x28   : > { %656 = vmatpush.msra.mxu3 %v468_v32  ;;  %597 = vmatpush.msra.mxu0 %v453_v33  ;;  %v406_v52 = vld [vmem:[#allocation5 + $0x128] sm:$0xff]  ;;  %v407_v53 = vld [vmem:[#allocation5 + $0x130] sm:$0xff]  ;;  %v408_v54 = vld [vmem:[#allocation5 + $0x138] sm:$0xff] }
  0x29   : > { %617 = vmatpush.msra.mxu1 %v454_v34  ;;  %637 = vmatpush.msra.mxu2 %v455_v35  ;;  %v393_v56 = vld [vmem:[#allocation5 + $0xc0] sm:$0xff]  ;;  %v394_v57 = vld [vmem:[#allocation5 + $0xc8] sm:$0xff]  ;;  %v395_v59 = vld [vmem:[#allocation5 + $0xd0] sm:$0xff] }
  0x2a   : > { %657 = vmatpush.msra.mxu3 %v456_v36  ;;  %598 = vmatpush.msra.mxu0 %v441_v37  ;;  %v396_v60 = vld [vmem:[#allocation5 + $0xd8] sm:$0xff]  ;;  %v381_v61 = vld [vmem:[#allocation5 + $0x60] sm:$0xff]  ;;  %v382_v62 = vld [vmem:[#allocation5 + $0x68] sm:$0xff] }
  0x2b   : > { %618 = vmatpush.msra.mxu1 %v442_v38  ;;  %638 = vmatpush.msra.mxu2 %v443_v39  ;;  %v383_v1 = vld [vmem:[#allocation5 + $0x70] sm:$0xff]  ;;  %v384_v2 = vld [vmem:[#allocation5 + $0x78] sm:$0xff]  ;;  %v369_v3 = vld [vmem:[#allocation5] sm:$0xff] }
  0x2c   : > { %658 = vmatpush.msra.mxu3 %v444_v40  ;;  %599 = vmatpush.msra.mxu0 %v429_v42  ;;  %v370_v4 = vld [vmem:[#allocation5 + $0x8] sm:$0xff]  ;;  %v371_v6 = vld [vmem:[#allocation5 + $0x10] sm:$0xff]  ;;  %v372_v8 = vld [vmem:[#allocation5 + $0x18] sm:$0xff] }
  0x2d   : > { %619 = vmatpush.msra.mxu1 %v430_v43  ;;  %639 = vmatpush.msra.mxu2 %v431_v44  ;;  %v554_v9 = vld [vmem:[#allocation5 + $0x5c8] sm:$0xff]  ;;  %v555_v10 = vld [vmem:[#allocation5 + $0x5d0] sm:$0xff]  ;;  %v556_v11 = vld [vmem:[#allocation5 + $0x5d8] sm:$0xff] }
  0x2e   : > { %659 = vmatpush.msra.mxu3 %v432_v45  ;;  %600 = vmatpush.msra.mxu0 %v417_v46  ;;  %v541_v12 = vld [vmem:[#allocation5 + $0x560] sm:$0xff]  ;;  %v542_v13 = vld [vmem:[#allocation5 + $0x568] sm:$0xff]  ;;  %v543_v14 = vld [vmem:[#allocation5 + $0x570] sm:$0xff] }
  0x2f   : > { %620 = vmatpush.msra.mxu1 %v418_v47  ;;  %640 = vmatpush.msra.mxu2 %v419_v48  ;;  %v544_v15 = vld [vmem:[#allocation5 + $0x578] sm:$0xff]  ;;  %v529_v16 = vld [vmem:[#allocation5 + $0x500] sm:$0xff]  ;;  %v530_v17 = vld [vmem:[#allocation5 + $0x508] sm:$0xff] }
  0x30   : > { %660 = vmatpush.msra.mxu3 %v420_v49  ;;  %601 = vmatpush.msra.mxu0 %v405_v51  ;;  %v531_v18 = vld [vmem:[#allocation5 + $0x510] sm:$0xff]  ;;  %v532_v19 = vld [vmem:[#allocation5 + $0x518] sm:$0xff]  ;;  %v517_v20 = vld [vmem:[#allocation5 + $0x4a0] sm:$0xff] }
  0x31   : > { %621 = vmatpush.msra.mxu1 %v406_v52  ;;  %641 = vmatpush.msra.mxu2 %v407_v53  ;;  %v518_v21 = vld [vmem:[#allocation5 + $0x4a8] sm:$0xff]  ;;  %v519_v22 = vld [vmem:[#allocation5 + $0x4b0] sm:$0xff]  ;;  %v520_v23 = vld [vmem:[#allocation5 + $0x4b8] sm:$0xff] }
  0x32   : > { %661 = vmatpush.msra.mxu3 %v408_v54  ;;  %602 = vmatpush.msra.mxu0 %v393_v56  ;;  %v505_v24 = vld [vmem:[#allocation5 + $0x440] sm:$0xff]  ;;  %v506_v25 = vld [vmem:[#allocation5 + $0x448] sm:$0xff]  ;;  %v507_v26 = vld [vmem:[#allocation5 + $0x450] sm:$0xff] }
  0x33   : > { %622 = vmatpush.msra.mxu1 %v394_v57  ;;  %642 = vmatpush.msra.mxu2 %v395_v59  ;;  %v508_v27 = vld [vmem:[#allocation5 + $0x458] sm:$0xff]  ;;  %v493_v28 = vld [vmem:[#allocation5 + $0x3e0] sm:$0xff]  ;;  %v494_v29 = vld [vmem:[#allocation5 + $0x3e8] sm:$0xff] }
  0x34   : > { %662 = vmatpush.msra.mxu3 %v396_v60  ;;  %603 = vmatpush.msra.mxu0 %v381_v61  ;;  %v495_v30 = vld [vmem:[#allocation5 + $0x3f0] sm:$0xff]  ;;  %v496_v31 = vld [vmem:[#allocation5 + $0x3f8] sm:$0xff]  ;;  %v481_v32 = vld [vmem:[#allocation5 + $0x380] sm:$0xff] }
  0x35   : > { %623 = vmatpush.msra.mxu1 %v382_v62  ;;  %643 = vmatpush.msra.mxu2 %v383_v1  ;;  %v482_v33 = vld [vmem:[#allocation5 + $0x388] sm:$0xff]  ;;  %v483_v34 = vld [vmem:[#allocation5 + $0x390] sm:$0xff]  ;;  %v484_v35 = vld [vmem:[#allocation5 + $0x398] sm:$0xff] }
  0x36   : > { %663 = vmatpush.msra.mxu3 %v384_v2  ;;  %604 = vmatpush.msra.mxu0 %v369_v3  ;;  %v469_v36 = vld [vmem:[#allocation5 + $0x320] sm:$0xff]  ;;  %v470_v37 = vld [vmem:[#allocation5 + $0x328] sm:$0xff]  ;;  %v471_v38 = vld [vmem:[#allocation5 + $0x330] sm:$0xff] }
  0x37   : > { %624 = vmatpush.msra.mxu1 %v370_v4  ;;  %644 = vmatpush.msra.mxu2 %v371_v6  ;;  %v472_v39 = vld [vmem:[#allocation5 + $0x338] sm:$0xff]  ;;  %v457_v40 = vld [vmem:[#allocation5 + $0x2c0] sm:$0xff]  ;;  %v458_v42 = vld [vmem:[#allocation5 + $0x2c8] sm:$0xff] }
  0x38   : > { %664 = vmatpush.msra.mxu3 %v372_v8  ;;  %v459_v43 = vld [vmem:[#allocation5 + $0x2d0] sm:$0xff]  ;;  %v460_v44 = vld [vmem:[#allocation5 + $0x2d8] sm:$0xff]  ;;  %v445_v45 = vld [vmem:[#allocation5 + $0x260] sm:$0xff] }
  0x39   : > { %689 = vmatpush.msrb.mxu1 %v554_v9  ;;  %709 = vmatpush.msrb.mxu2 %v555_v10  ;;  %v446_v46 = vld [vmem:[#allocation5 + $0x268] sm:$0xff]  ;;  %v447_v47 = vld [vmem:[#allocation5 + $0x270] sm:$0xff]  ;;  %v448_v48 = vld [vmem:[#allocation5 + $0x278] sm:$0xff] }
  0x3a   : > { %729 = vmatpush.msrb.mxu3 %v556_v11  ;;  %v433_v49 = vld [vmem:[#allocation5 + $0x200] sm:$0xff]  ;;  %v434_v51 = vld [vmem:[#allocation5 + $0x208] sm:$0xff]  ;;  %v435_v52 = vld [vmem:[#allocation5 + $0x210] sm:$0xff] }
  0x3b   : > { %690 = vmatpush.msrb.mxu1 %v542_v13  ;;  %710 = vmatpush.msrb.mxu2 %v543_v14  ;;  %v436_v53 = vld [vmem:[#allocation5 + $0x218] sm:$0xff]  ;;  %v421_v54 = vld [vmem:[#allocation5 + $0x1a0] sm:$0xff]  ;;  %v423_v56 = vld [vmem:[#allocation5 + $0x1b0] sm:$0xff] }
  0x3c   : > { %730 = vmatpush.msrb.mxu3 %v544_v15  ;;  %v424_v57 = vld [vmem:[#allocation5 + $0x1b8] sm:$0xff]  ;;  %v410_v59 = vld [vmem:[#allocation5 + $0x148] sm:$0xff]  ;;  %v411_v60 = vld [vmem:[#allocation5 + $0x150] sm:$0xff] }
  0x3d   : > { %691 = vmatpush.msrb.mxu1 %v530_v17  ;;  %711 = vmatpush.msrb.mxu2 %v531_v18  ;;  %v412_v61 = vld [vmem:[#allocation5 + $0x158] sm:$0xff]  ;;  %v397_v62 = vld [vmem:[#allocation5 + $0xe0] sm:$0xff]  ;;  %v399_v1 = vld [vmem:[#allocation5 + $0xf0] sm:$0xff] }
  0x3e   : > { %731 = vmatpush.msrb.mxu3 %v532_v19  ;;  %v400_v2 = vld [vmem:[#allocation5 + $0xf8] sm:$0xff]  ;;  %v385_v3 = vld [vmem:[#allocation5 + $0x80] sm:$0xff]  ;;  %v386_v4 = vld [vmem:[#allocation5 + $0x88] sm:$0xff] }
  0x3f   : > { %692 = vmatpush.msrb.mxu1 %v518_v21  ;;  %712 = vmatpush.msrb.mxu2 %v519_v22  ;;  %v387_v6 = vld [vmem:[#allocation5 + $0x90] sm:$0xff]  ;;  %v373_v8 = vld [vmem:[#allocation5 + $0x20] sm:$0xff]  ;;  %v376_v10 = vld [vmem:[#allocation5 + $0x38] sm:$0xff] }
  0x40   : > { %732 = vmatpush.msrb.mxu3 %v520_v23  ;;  %v375_v9 = vld [vmem:[#allocation5 + $0x30] sm:$0xff]  ;;  %v1421_v22 = vld [vmem:[%s1740_s2] ss:$0 sm:$0xff] }
  0x41   : > { %693 = vmatpush.msrb.mxu1 %v506_v25  ;;  %713 = vmatpush.msrb.mxu2 %v507_v26  ;;  %v557_v26 = vld [vmem:[#allocation5 + $0x5e0] sm:$0xff] }
  0x42   : > { %733 = vmatpush.msrb.mxu3 %v508_v27  ;;  %v558_v27 = vld [vmem:[#allocation5 + $0x5e8] sm:$0xff] }
  0x43   : > { %694 = vmatpush.msrb.mxu1 %v494_v29  ;;  %714 = vmatpush.msrb.mxu2 %v495_v30  ;;  %v560_v29 = vld [vmem:[#allocation5 + $0x5f8] sm:$0xff]  ;;  %v545_v30 = vld [vmem:[#allocation5 + $0x580] sm:$0xff] }
  0x44   : > { %734 = vmatpush.msrb.mxu3 %v496_v31  ;;  %v546_v31 = vld [vmem:[#allocation5 + $0x588] sm:$0xff] }
  0x45   : > { %695 = vmatpush.msrb.mxu1 %v482_v33  ;;  %715 = vmatpush.msrb.mxu2 %v483_v34  ;;  %v533_v33 = vld [vmem:[#allocation5 + $0x520] sm:$0xff]  ;;  %v534_v34 = vld [vmem:[#allocation5 + $0x528] sm:$0xff] }
  0x46   : > { %735 = vmatpush.msrb.mxu3 %v484_v35  ;;  %v535_v35 = vld [vmem:[#allocation5 + $0x530] sm:$0xff] }
  0x47   : > { %696 = vmatpush.msrb.mxu1 %v470_v37  ;;  %716 = vmatpush.msrb.mxu2 %v471_v38  ;;  %v521_v37 = vld [vmem:[#allocation5 + $0x4c0] sm:$0xff]  ;;  %v522_v38 = vld [vmem:[#allocation5 + $0x4c8] sm:$0xff] }
  0x48   : > { %736 = vmatpush.msrb.mxu3 %v472_v39  ;;  %v523_v39 = vld [vmem:[#allocation5 + $0x4d0] sm:$0xff] }
  0x49   : > { %697 = vmatpush.msrb.mxu1 %v458_v42  ;;  %717 = vmatpush.msrb.mxu2 %v459_v43  ;;  %v509_v42 = vld [vmem:[#allocation5 + $0x460] sm:$0xff]  ;;  %v510_v43 = vld [vmem:[#allocation5 + $0x468] sm:$0xff] }
  0x4a   : > { %737 = vmatpush.msrb.mxu3 %v460_v44  ;;  %v511_v44 = vld [vmem:[#allocation5 + $0x470] sm:$0xff] }
  0x4b   : > { %698 = vmatpush.msrb.mxu1 %v446_v46  ;;  %718 = vmatpush.msrb.mxu2 %v447_v47  ;;  %v497_v46 = vld [vmem:[#allocation5 + $0x400] sm:$0xff]  ;;  %v498_v47 = vld [vmem:[#allocation5 + $0x408] sm:$0xff] }
  0x4c   : > { %738 = vmatpush.msrb.mxu3 %v448_v48  ;;  %v499_v48 = vld [vmem:[#allocation5 + $0x410] sm:$0xff] }
  0x4d   : > { %699 = vmatpush.msrb.mxu1 %v434_v51  ;;  %719 = vmatpush.msrb.mxu2 %v435_v52  ;;  %v485_v51 = vld [vmem:[#allocation5 + $0x3a0] sm:$0xff]  ;;  %v486_v52 = vld [vmem:[#allocation5 + $0x3a8] sm:$0xff] }
  0x4e   : > { %739 = vmatpush.msrb.mxu3 %v436_v53  ;;  %v487_v53 = vld [vmem:[#allocation5 + $0x3b0] sm:$0xff] }
  0x4f   : > { %720 = vmatpush.msrb.mxu2 %v423_v56  ;;  %v474_v56 = vld [vmem:[#allocation5 + $0x348] sm:$0xff] }
  0x50   : > { %740 = vmatpush.msrb.mxu3 %v424_v57  ;;  %v475_v57 = vld [vmem:[#allocation5 + $0x350] sm:$0xff] }
  0x51   : > { %721 = vmatpush.msrb.mxu2 %v411_v60  ;;  %v462_v60 = vld [vmem:[#allocation5 + $0x2e8] sm:$0xff] }
  0x52   : > { %741 = vmatpush.msrb.mxu3 %v412_v61  ;;  %v463_v61 = vld [vmem:[#allocation5 + $0x2f0] sm:$0xff] }
  0x53   : > { %722 = vmatpush.msrb.mxu2 %v399_v1  ;;  %v450_v1 = vld [vmem:[#allocation5 + $0x288] sm:$0xff] }
  0x54   : > { %742 = vmatpush.msrb.mxu3 %v400_v2  ;;  %v451_v2 = vld [vmem:[#allocation5 + $0x290] sm:$0xff] }
  0x55   : > { %723 = vmatpush.msrb.mxu2 %v387_v6  ;;  %v438_v6 = vld [vmem:[#allocation5 + $0x228] sm:$0xff] }
  0x57   : > { %724 = vmatpush.msrb.mxu2 %v375_v9  ;;  %v426_v9 = vld [vmem:[#allocation5 + $0x1c8] sm:$0xff] }
  0x90   : > { %v337_v55 = vpop.xlane.xlu0 %336 }
  0x91   : > { %v338_v58 = vmul.f32 0.03125, %v337_v55  ;;  %v422_v55 = vld [vmem:[#allocation5 + $0x1a8] sm:$0xff] }
  0x92   : > { %700 = vmatpush.msrb.mxu1 %v422_v55  ;;  %v473_v55 = vld [vmem:[#allocation5 + $0x340] sm:$0xff] }
  0x93   : > { %v339_v63 = vsub.f32 %v1642_v0, %v338_v58  ;;  %v553_v0 = vld [vmem:[#allocation5 + $0x5c0] sm:$0xff] }
  0x94   : > { %669 = vmatpush.msrb.mxu0 %v553_v0  ;;  %v409_v58 = vld [vmem:[#allocation5 + $0x140] sm:$0xff]  ;;  %701 = vmatpush.msrb.mxu1 %v410_v59  ;;  %v374_v0 = vld [vmem:[#allocation5 + $0x28] sm:$0xff] }
  0x95   : > { %v1650_v5 = vsel %vm335_vm0, %v339_v63, 0.0  ;;  %v398_v63 = vld [vmem:[#allocation5 + $0xe8] sm:$0xff]  ;;  %v461_v59 = vld [vmem:[#allocation5 + $0x2e0] sm:$0xff] }
  0x96   : > { %v343_v7 = vmul.f32 %v1650_v5, %v1650_v5  ;;  %670 = vmatpush.msrb.mxu0 %v541_v12  ;;  %702 = vmatpush.msrb.mxu1 %v398_v63  ;;  %v449_v63 = vld [vmem:[#allocation5 + $0x280] sm:$0xff] }
  0x98   : > { %344 = vadd.xlane.f32.xlu0 %v343_v7  ;;  %671 = vmatpush.msrb.mxu0 %v529_v16  ;;  %v388_v7 = vld [vmem:[#allocation5 + $0x98] sm:$0xff] }
  0x99   : > { %703 = vmatpush.msrb.mxu1 %v386_v4  ;;  %743 = vmatpush.msrb.mxu3 %v388_v7  ;;  %v437_v4 = vld [vmem:[#allocation5 + $0x220] sm:$0xff]  ;;  %v439_v7 = vld [vmem:[#allocation5 + $0x230] sm:$0xff] }
  0x9a   : > { %672 = vmatpush.msrb.mxu0 %v517_v20  ;;  %v1420_v20 = vld [vmem:[%s1739_s1] ss:$0 sm:$0xff] }
  0x9b   : > { %704 = vmatpush.msrb.mxu1 %v374_v0  ;;  %744 = vmatpush.msrb.mxu3 %v376_v10  ;;  %v425_v0 = vld [vmem:[#allocation5 + $0x1c0] sm:$0xff]  ;;  %v427_v10 = vld [vmem:[#allocation5 + $0x1d0] sm:$0xff] }
  0x9c   : > { %673 = vmatpush.msrb.mxu0 %v505_v24 }
  0x9e   : > { %674 = vmatpush.msrb.mxu0 %v493_v28  ;;  %v559_v28 = vld [vmem:[#allocation5 + $0x5f0] sm:$0xff] }
  0xa0   : > { %675 = vmatpush.msrb.mxu0 %v481_v32  ;;  %v548_v32 = vld [vmem:[#allocation5 + $0x598] sm:$0xff] }
  0xa2   : > { %676 = vmatpush.msrb.mxu0 %v469_v36  ;;  %v536_v36 = vld [vmem:[#allocation5 + $0x538] sm:$0xff] }
  0xa4   : > { %677 = vmatpush.msrb.mxu0 %v457_v40  ;;  %v524_v40 = vld [vmem:[#allocation5 + $0x4d8] sm:$0xff] }
  0xa6   : > { %678 = vmatpush.msrb.mxu0 %v445_v45  ;;  %v512_v45 = vld [vmem:[#allocation5 + $0x478] sm:$0xff] }
  0xa8   : > { %679 = vmatpush.msrb.mxu0 %v433_v49  ;;  %v500_v49 = vld [vmem:[#allocation5 + $0x418] sm:$0xff] }
  0xaa   : > { %680 = vmatpush.msrb.mxu0 %v421_v54  ;;  %v488_v54 = vld [vmem:[#allocation5 + $0x3b8] sm:$0xff] }
  0xac   : > { %681 = vmatpush.msrb.mxu0 %v409_v58  ;;  %v476_v58 = vld [vmem:[#allocation5 + $0x358] sm:$0xff] }
  0xae   : > { %682 = vmatpush.msrb.mxu0 %v397_v62  ;;  %v464_v62 = vld [vmem:[#allocation5 + $0x2f8] sm:$0xff] }
  0xb0   : > { %683 = vmatpush.msrb.mxu0 %v385_v3  ;;  %v452_v3 = vld [vmem:[#allocation5 + $0x298] sm:$0xff] }
  0xb2   : > { %684 = vmatpush.msrb.mxu0 %v373_v8  ;;  %v440_v8 = vld [vmem:[#allocation5 + $0x238] sm:$0xff] }
 0x10b   : > { %v345_v11 = vpop.xlane.xlu0 %344 }
 0x10c   : > { %v346_v12 = vmul.f32 0.03125, %v345_v11  ;;  %v428_v11 = vld [vmem:[#allocation5 + $0x1d8] sm:$0xff] }
 0x10e   : > { %v347_v13 = vadd.f32 1e-05, %v346_v12  ;;  %v413_v12 = vld [vmem:[#allocation5 + $0x160] sm:$0xff] }
 0x110   : > { %1423 = vrsqrt.f32 %v347_v13  ;;  %vm354_vm2 = vweird.f32 %v347_v13 }
 0x116   : > { %v1424_v14 = vpop.eup %1423 }
 0x117   : > { %v349_v15 = vmul.f32 %v1424_v14, %v347_v13  ;;  %vm355_vm1 = vweird.f32 %v1424_v14  ;;  %v414_v13 = vld [vmem:[#allocation5 + $0x168] sm:$0xff] }
 0x118   : > { %vm356_vm3 = vmor %vm354_vm2, %vm355_vm1 }
 0x119   : > { %v350_v16 = vmul.f32 %v1424_v14, %v349_v15  ;;  %v416_v15 = vld [vmem:[#allocation5 + $0x178] sm:$0xff] }
 0x11b   : > { %v351_v17 = vmul.f32 0.5, %v350_v16  ;;  %v401_v16 = vld [vmem:[#allocation5 + $0x100] sm:$0xff] }
 0x11d   : > { %v352_v18 = vsub.f32 1.5, %v351_v17  ;;  %v402_v17 = vld [vmem:[#allocation5 + $0x108] sm:$0xff] }
 0x11f   : > { %v353_v19 = vmul.f32 %v1424_v14, %v352_v18  ;;  %v403_v18 = vld [vmem:[#allocation5 + $0x110] sm:$0xff] }
 0x121   : > { %v357_v21 = vsel %vm356_vm3, %v1424_v14, %v353_v19  ;;  %v415_v14 = vld [vmem:[#allocation5 + $0x170] sm:$0xff]  ;;  %v404_v19 = vld [vmem:[#allocation5 + $0x118] sm:$0xff] }
 0x122   : > { %v358_v23 = vmul.f32 %v357_v21, %v1650_v5  ;;  %v547_v5 = vld [vmem:[#allocation5 + $0x590] sm:$0xff]  ;;  %v390_v21 = vld [vmem:[#allocation5 + $0xa8] sm:$0xff] }
 0x124   : > { %v363_v24 = vmul.f32 %v1420_v20, %v358_v23  ;;  %v389_v20 = vld [vmem:[#allocation5 + $0xa0] sm:$0xff]  ;;  %v392_v23 = vld [vmem:[#allocation5 + $0xb8] sm:$0xff] }
 0x126   : > { %v1661_v25 = vadd.f32 %v1421_v22, %v363_v24  ;;  %v391_v22 = vld [vmem:[#allocation5 + $0xb0] sm:$0xff]  ;;  %v377_v24 = vld [vmem:[#allocation5 + $0x40] sm:$0xff] }
 0x128   : > { %605 = vmatmul.f32.vlgmr.msra.gmra.mxu0 %v1661_v25  ;;  %625 = vmatmul.f32.vlgmr.msra.gmra.mxu1 %v1661_v25 }
 0x129   : > { %645 = vmatmul.f32.vlgmr.msra.gmra.mxu2 %v1661_v25  ;;  %665 = vmatmul.f32.vlgmr.msra.gmra.mxu3 %v1661_v25 }
 0x12a   : > { %749 = vmatpush.msra.mxu0 %v557_v26  ;;  %769 = vmatpush.msra.mxu1 %v558_v27  ;;  %v378_v26 = vld [vmem:[#allocation5 + $0x48] sm:$0xff]  ;;  %v379_v27 = vld [vmem:[#allocation5 + $0x50] sm:$0xff] }
 0x12b   : > { %789 = vmatpush.msra.mxu2 %v559_v28  ;;  %809 = vmatpush.msra.mxu3 %v560_v29  ;;  %v380_v28 = vld [vmem:[#allocation5 + $0x58] sm:$0xff] }
 0x12c   : > { %750 = vmatpush.msra.mxu0 %v545_v30  ;;  %770 = vmatpush.msra.mxu1 %v546_v31  ;;  %v561_v31 = vld [vmem:[%s1742_s4] sm:$0xff] }
 0x12d   : > { %790 = vmatpush.msra.mxu2 %v547_v5  ;;  %810 = vmatpush.msra.mxu3 %v548_v32 }
 0x12e   : > { %751 = vmatpush.msra.mxu0 %v533_v33  ;;  %771 = vmatpush.msra.mxu1 %v534_v34  ;;  %v569_v33 = vperm.slane %v561_v31, 4  ;;  %v570_v34 = vperm.slane %v561_v31, 5 }
 0x12f   : > { %791 = vmatpush.msra.mxu2 %v535_v35  ;;  %811 = vmatpush.msra.mxu3 %v536_v36  ;;  %v565_v35 = vperm.slane %v561_v31, 0  ;;  %v566_v36 = vperm.slane %v561_v31, 1 }
 0x130   : > { %752 = vmatpush.msra.mxu0 %v521_v37  ;;  %772 = vmatpush.msra.mxu1 %v522_v38 }
 0x131   : > { %792 = vmatpush.msra.mxu2 %v523_v39  ;;  %812 = vmatpush.msra.mxu3 %v524_v40 }
 0x132   : > { %685 = vmatmul.f32.vlgmr.msrb.gmra.mxu0 %v1661_v25  ;;  %705 = vmatmul.f32.vlgmr.msrb.gmra.mxu1 %v1661_v25 }
 0x133   : > { %725 = vmatmul.f32.vlgmr.msrb.gmra.mxu2 %v1661_v25  ;;  %745 = vmatmul.f32.vlgmr.msrb.gmra.mxu3 %v1661_v25 }
 0x134   : > { %753 = vmatpush.msra.mxu0 %v509_v42  ;;  %773 = vmatpush.msra.mxu1 %v510_v43  ;;  %v571_v43 = vperm.slane %v561_v31, 6 }
 0x135   : > { %793 = vmatpush.msra.mxu2 %v511_v44  ;;  %813 = vmatpush.msra.mxu3 %v512_v45  ;;  %v572_v44 = vperm.slane %v561_v31, 7  ;;  %v567_v45 = vperm.slane %v561_v31, 2 }
 0x136   : > { %754 = vmatpush.msra.mxu0 %v497_v46  ;;  %774 = vmatpush.msra.mxu1 %v498_v47  ;;  %v568_v46 = vperm.slane %v561_v31, 3 }
 0x137   : > { %794 = vmatpush.msra.mxu2 %v499_v48  ;;  %814 = vmatpush.msra.mxu3 %v500_v49 }
 0x138   : > { %755 = vmatpush.msra.mxu0 %v485_v51  ;;  %775 = vmatpush.msra.mxu1 %v486_v52 }
 0x139   : > { %795 = vmatpush.msra.mxu2 %v487_v53  ;;  %815 = vmatpush.msra.mxu3 %v488_v54  ;;  %v562_v54 = vld [vmem:[%s1742_s4 + $0x8] sm:$0xf] }
 0x13a   : > { %756 = vmatpush.msra.mxu0 %v473_v55  ;;  %776 = vmatpush.msra.mxu1 %v474_v56  ;;  %v573_v55 = vperm.slane %v562_v54, 0  ;;  %v574_v56 = vperm.slane %v562_v54, 1 }
 0x13b   : > { %796 = vmatpush.msra.mxu2 %v475_v57  ;;  %816 = vmatpush.msra.mxu3 %v476_v58 }
 0x13c   : > { %757 = vmatpush.msra.mxu0 %v461_v59  ;;  %777 = vmatpush.msra.mxu1 %v462_v60 }
 0x13d   : > { %797 = vmatpush.msra.mxu2 %v463_v61  ;;  %817 = vmatpush.msra.mxu3 %v464_v62  ;;  %v575_v61 = vperm.slane %v562_v54, 2  ;;  %v576_v62 = vperm.slane %v562_v54, 3  ;;  %v1144_v54 = vld [vmem:[#allocation7 + $0x160] sm:$0xff] }
 0x13e   : > { %758 = vmatpush.msra.mxu0 %v449_v63  ;;  %778 = vmatpush.msra.mxu1 %v450_v1 }
 0x13f   : > { %798 = vmatpush.msra.mxu2 %v451_v2  ;;  %818 = vmatpush.msra.mxu3 %v452_v3 }
 0x140   : > { %759 = vmatpush.msra.mxu0 %v437_v4  ;;  %779 = vmatpush.msra.mxu1 %v438_v6  ;;  %v949_v4 = vshrl.u32 %v333_v41, 7 }
 0x141   : > { %799 = vmatpush.msra.mxu2 %v439_v7  ;;  %819 = vmatpush.msra.mxu3 %v440_v8 }
 0x142   : > { %760 = vmatpush.msra.mxu0 %v425_v0  ;;  %780 = vmatpush.msra.mxu1 %v426_v9  ;;  %vm954_vm4 = vcmp.le.s32.totalorder %v1646_v50, %v949_v4  ;;  %v1106_v4 = vld [vmem:[#allocation7 + $0x30] sm:$0xff] }
 0x143   : > { %800 = vmatpush.msra.mxu2 %v427_v10  ;;  %820 = vmatpush.msra.mxu3 %v428_v11  ;;  %vm1684_vm6 = vmand %vm954_vm4, %vm955_vm5 }
 0x144   : > { %761 = vmatpush.msra.mxu0 %v413_v12  ;;  %781 = vmatpush.msra.mxu1 %v414_v13 }
 0x145   : > { %801 = vmatpush.msra.mxu2 %v415_v14  ;;  %821 = vmatpush.msra.mxu3 %v416_v15 }
 0x146   : > { %762 = vmatpush.msra.mxu0 %v401_v16  ;;  %782 = vmatpush.msra.mxu1 %v402_v17 }
 0x147   : > { %802 = vmatpush.msra.mxu2 %v403_v18  ;;  %822 = vmatpush.msra.mxu3 %v404_v19 }
 0x148   : > { %763 = vmatpush.msra.mxu0 %v389_v20  ;;  %783 = vmatpush.msra.mxu1 %v390_v21 }
 0x149   : > { %803 = vmatpush.msra.mxu2 %v391_v22  ;;  %823 = vmatpush.msra.mxu3 %v392_v23 }
 0x14a   : > { %764 = vmatpush.msra.mxu0 %v377_v24  ;;  %784 = vmatpush.msra.mxu1 %v378_v26 }
 0x14b   : > { %804 = vmatpush.msra.mxu2 %v379_v27  ;;  %824 = vmatpush.msra.mxu3 %v380_v28 }
 0x14c   : > { %765 = vmatmul.f32.vlgmr.msra.gmra.mxu0 %v1661_v25  ;;  %785 = vmatmul.f32.vlgmr.msra.gmra.mxu1 %v1661_v25 }
 0x14d   : > { %805 = vmatmul.f32.vlgmr.msra.gmra.mxu2 %v1661_v25  ;;  %825 = vmatmul.f32.vlgmr.msra.gmra.mxu3 %v1661_v25 }
 0x1a5   : > { %v606_v29 = vpop.f32.mrf.mxu0  ;;  %v626_v30 = vpop.f32.mrf.mxu1 }
 0x1a6   : > { %v607_v42 = vadd.f32 %v606_v29, %v565_v35  ;;  %v627_v25 = vadd.f32 %v626_v30, %v566_v36 }
 0x1ac   : > { %v646_v5 = vpop.f32.mrf.mxu2  ;;  %v666_v32 = vpop.f32.mrf.mxu3 }
 0x1ad   : > { %v647_v52 = vadd.f32 %v646_v5, %v567_v45  ;;  %v667_v53 = vadd.f32 %v666_v32, %v568_v46  ;;  %v1112_v45 = vld [vmem:[#allocation7 + $0x60] sm:$0xff]  ;;  %v1131_v46 = vld [vmem:[#allocation7 + $0xf8] sm:$0xff] }
 0x1af   : > { %v686_v37 = vpop.f32.mrf.mxu0  ;;  %v706_v38 = vpop.f32.mrf.mxu1 }
 0x1b0   : > { %v687_v39 = vadd.f32 %v686_v37, %v569_v33  ;;  %v707_v40 = vadd.f32 %v706_v38, %v570_v34 }
 0x1b2   : > { %879 = vmatpush.xpose.msrb.mxu0 %v687_v39  ;;  %899 = vmatpush.xpose.msrb.mxu1 %v707_v40 }
 0x1b5   : > { %880 = vmatmul.f32.vlgmr.msrb.gmra.mxu0 %v607_v42  ;;  %900 = vmatmul.f32.vlgmr.msrb.gmra.mxu1 %v627_v25  ;;  %v1115_v42 = vld [vmem:[#allocation7 + $0x78] sm:$0xff]  ;;  %v1114_v25 = vld [vmem:[#allocation7 + $0x70] sm:$0xff] }
 0x1b6   : > { %v726_v47 = vpop.f32.mrf.mxu2  ;;  %v746_v48 = vpop.f32.mrf.mxu3 }
 0x1b7   : > { %v727_v49 = vadd.f32 %v726_v47, %v571_v43  ;;  %v747_v51 = vadd.f32 %v746_v48, %v572_v44  ;;  %v1113_v43 = vld [vmem:[#allocation7 + $0x68] sm:$0xff]  ;;  %v1147_v44 = vld [vmem:[#allocation7 + $0x178] sm:$0xff]  ;;  %v1146_v47 = vld [vmem:[#allocation7 + $0x170] sm:$0xff] }
 0x1b8   : > { %v1130_v48 = vld [vmem:[#allocation7 + $0xf0] sm:$0xff] }
 0x1b9   : > { %919 = vmatpush.xpose.msrb.mxu2 %v727_v49  ;;  %939 = vmatpush.xpose.msrb.mxu3 %v747_v51  ;;  %v1145_v49 = vld [vmem:[#allocation7 + $0x168] sm:$0xff]  ;;  %v1111_v51 = vld [vmem:[#allocation7 + $0x58] sm:$0xff] }
 0x1bc   : > { %920 = vmatmul.f32.vlgmr.msrb.gmra.mxu2 %v647_v52  ;;  %940 = vmatmul.f32.vlgmr.msrb.gmra.mxu3 %v667_v53  ;;  %v1129_v52 = vld [vmem:[#allocation7 + $0xe8] sm:$0xff] }
 0x1c9   : > { %v766_v57 = vpop.f32.mrf.mxu0  ;;  %v786_v58 = vpop.f32.mrf.mxu1 }
 0x1ca   : > { %v767_v59 = vadd.f32 %v766_v57, %v573_v55  ;;  %v787_v60 = vadd.f32 %v786_v58, %v574_v56  ;;  %v1163_v55 = vld [vmem:[#allocation7 + $0x1f8] sm:$0xff]  ;;  %v1110_v57 = vld [vmem:[#allocation7 + $0x50] sm:$0xff]  ;;  %v1128_v58 = vld [vmem:[#allocation7 + $0xe0] sm:$0xff] }
 0x1cc   : > { %1026 = vmatpush.msra.mxu0 %v767_v59  ;;  %1049 = vmatpush.msra.mxu1 %v787_v60  ;;  %v1143_v59 = vld [vmem:[#allocation7 + $0x158] sm:$0xff]  ;;  %v1162_v60 = vld [vmem:[#allocation7 + $0x1f0] sm:$0xff] }
 0x1ce   : > { %1164 = vmatpush.msrb.mxu0 %v1115_v42  ;;  %1184 = vmatpush.msrb.mxu1 %v1131_v46  ;;  %v1118_v42 = vld [vmem:[#allocation7 + $0x90] sm:$0xff]  ;;  %v1152_v46 = vld [vmem:[#allocation7 + $0x1a0] sm:$0xff] }
 0x1d0   : > { %v806_v63 = vpop.f32.mrf.mxu2  ;;  %v826_v1 = vpop.f32.mrf.mxu3  ;;  %1165 = vmatpush.msrb.mxu0 %v1114_v25  ;;  %1185 = vmatpush.msrb.mxu1 %v1130_v48  ;;  %v1133_v25 = vld [vmem:[#allocation7 + $0x108] sm:$0xff]  ;;  %v1151_v48 = vld [vmem:[#allocation7 + $0x198] sm:$0xff] }
 0x1d1   : > { %v807_v2 = vadd.f32 %v806_v63, %v575_v61  ;;  %v827_v3 = vadd.f32 %v826_v1, %v576_v62  ;;  %v1109_v61 = vld [vmem:[#allocation7 + $0x48] sm:$0xff]  ;;  %v1127_v62 = vld [vmem:[#allocation7 + $0xd8] sm:$0xff]  ;;  %v1142_v63 = vld [vmem:[#allocation7 + $0x150] sm:$0xff] }
 0x1d2   : > { %1166 = vmatpush.msrb.mxu0 %v1113_v43  ;;  %1186 = vmatpush.msrb.mxu1 %v1129_v52  ;;  %v1108_v1 = vld [vmem:[#allocation7 + $0x40] sm:$0xff]  ;;  %v1153_v43 = vld [vmem:[#allocation7 + $0x1a8] sm:$0xff] }
 0x1d3   : > { %1072 = vmatpush.msra.mxu2 %v807_v2  ;;  %1095 = vmatpush.msra.mxu3 %v827_v3  ;;  %v1107_v3 = vld [vmem:[#allocation7 + $0x38] sm:$0xff]  ;;  %v1148_v52 = vld [vmem:[#allocation7 + $0x180] sm:$0xff] }
 0x1d4   : > { %1167 = vmatpush.msrb.mxu0 %v1112_v45  ;;  %1187 = vmatpush.msrb.mxu1 %v1128_v58  ;;  %v1132_v45 = vld [vmem:[#allocation7 + $0x100] sm:$0xff] }
 0x1d5   : > { %1204 = vmatpush.msrb.mxu2 %v1147_v44  ;;  %1224 = vmatpush.msrb.mxu3 %v1163_v55  ;;  %v1117_v44 = vld [vmem:[#allocation7 + $0x88] sm:$0xff] }
 0x1d6   : > { %1168 = vmatpush.msrb.mxu0 %v1111_v51  ;;  %1188 = vmatpush.msrb.mxu1 %v1127_v62  ;;  %v1149_v51 = vld [vmem:[#allocation7 + $0x188] sm:$0xff]  ;;  %v1422_v62 = vld [vmem:[%s1744_s6] ss:$0 sm:$0xff] }
 0x1d7   : > { %1205 = vmatpush.msrb.mxu2 %v1146_v47  ;;  %1225 = vmatpush.msrb.mxu3 %v1162_v60  ;;  %v1116_v47 = vld [vmem:[#allocation7 + $0x80] sm:$0xff] }
 0x1d8   : > { %1169 = vmatpush.msrb.mxu0 %v1110_v57 }
 0x1d9   : > { %1206 = vmatpush.msrb.mxu2 %v1145_v49  ;;  %v1150_v49 = vld [vmem:[#allocation7 + $0x190] sm:$0xff] }
 0x1da   : > { %1170 = vmatpush.msrb.mxu0 %v1109_v61 }
 0x1db   : > { %1207 = vmatpush.msrb.mxu2 %v1144_v54 }
 0x1dc   : > { %1171 = vmatpush.msrb.mxu0 %v1108_v1 }
 0x1dd   : > { %1208 = vmatpush.msrb.mxu2 %v1143_v59 }
 0x1de   : > { %1172 = vmatpush.msrb.mxu0 %v1107_v3  ;;  %v1441_v3 = vld [vmem:[%s1639_s29] sm:$0xff] }
 0x1df   : > { %1209 = vmatpush.msrb.mxu2 %v1142_v63 }
 0x1e0   : > { %1173 = vmatpush.msrb.mxu0 %v1106_v4 }
 0x232   : > { %v881_v6 = vpop.f32.mrf.mxu0  ;;  %v901_v0 = vpop.f32.mrf.mxu1 }
 0x233   : > { %v944_v8 = vmul.f32 0.17677669, %v881_v6  ;;  %v945_v11 = vmul.f32 0.17677669, %v901_v0  ;;  %v1105_v6 = vld [vmem:[#allocation7 + $0x28] sm:$0xff] }
 0x234   : > { %1174 = vmatpush.msrb.mxu0 %v1105_v6 }
 0x235   : > { %v959_v9 = vsel %vm1684_vm6, %v944_v8, -1e+30  ;;  %v960_v41 = vsel %vm1684_vm6, %v945_v11, -1e+30  ;;  %v1104_v8 = vld [vmem:[#allocation7 + $0x20] sm:$0xff]  ;;  %v1103_v11 = vld [vmem:[#allocation7 + $0x18] sm:$0xff] }
 0x236   : > { %v964_v10 = vsel %vm963_vm7, %v959_v9, -inf  ;;  %v967_v50 = vsel %vm963_vm7, %v960_v41, -inf  ;;  %1175 = vmatpush.msrb.mxu0 %v1104_v8 }
 0x237   : > { %965 = vmax.xlane.f32.xlu2 %v964_v10 }
 0x238   : > { %1176 = vmatpush.msrb.mxu0 %v1103_v11 }
 0x23f   : > { %v921_v12 = vpop.f32.mrf.mxu2  ;;  %968 = vmax.xlane.f32.xlu2 %v967_v50  ;;  %v941_v14 = vpop.f32.mrf.mxu3  ;;  %v1101_v50 = vld [vmem:[#allocation7 + $0x8] sm:$0xff] }
 0x240   : > { %v946_v13 = vmul.f32 0.17677669, %v921_v12  ;;  %v947_v17 = vmul.f32 0.17677669, %v941_v14 }
 0x242   : > { %v961_v15 = vsel %vm1684_vm6, %v946_v13, -1e+30  ;;  %v962_v18 = vsel %vm1684_vm6, %v947_v17, -1e+30  ;;  %v1126_v17 = vld [vmem:[#allocation7 + $0xd0] sm:$0xff] }
 0x243   : > { %v970_v16 = vsel %vm963_vm7, %v961_v15, -inf  ;;  %v973_v19 = vsel %vm963_vm7, %v962_v18, -inf  ;;  %1189 = vmatpush.msrb.mxu1 %v1126_v17 }
 0x244   : > { %971 = vmax.xlane.f32.xlu1 %v970_v16  ;;  %v1100_v16 = vld [vmem:[#allocation7] sm:$0xff] }
 0x24c   : > { %974 = vmax.xlane.f32.xlu1 %v973_v19  ;;  %v1161_v19 = vld [vmem:[#allocation7 + $0x1e8] sm:$0xff] }
 0x24d   : > { %1226 = vmatpush.msrb.mxu3 %v1161_v19 }
 0x2aa   : > { %v966_v20 = vpop.xlane.xlu2 %965 }
 0x2ab   : > { %v976_v21 = vsub.f32 %v959_v9, %v966_v20  ;;  %v1125_v20 = vld [vmem:[#allocation7 + $0xc8] sm:$0xff] }
 0x2ac   : > { %1190 = vmatpush.msrb.mxu1 %v1125_v20 }
 0x2ad   : > { %v980_v22 = vmul.f32 1.442695, %v976_v21  ;;  %v1140_v21 = vld [vmem:[#allocation7 + $0x140] sm:$0xff] }
 0x2af   : > { %1425 = vpow2.f32 %v980_v22  ;;  %v1160_v22 = vld [vmem:[#allocation7 + $0x1e0] sm:$0xff] }
 0x2b0   : > { %1227 = vmatpush.msrb.mxu3 %v1160_v22 }
 0x2b2   : > { %v969_v26 = vpop.xlane.xlu2 %968 }
 0x2b3   : > { %v977_v29 = vsub.f32 %v960_v41, %v969_v26  ;;  %v1102_v41 = vld [vmem:[#allocation7 + $0x10] sm:$0xff]  ;;  %v1159_v26 = vld [vmem:[#allocation7 + $0x1d8] sm:$0xff] }
 0x2b4   : > { %1177 = vmatpush.msrb.mxu0 %v1102_v41  ;;  %1228 = vmatpush.msrb.mxu3 %v1159_v26 }
 0x2b5   : > { %v1426_v23 = vpop.eup %1425  ;;  %v982_v31 = vmul.f32 1.442695, %v977_v29  ;;  %v1158_v29 = vld [vmem:[#allocation7 + $0x1d0] sm:$0xff] }
 0x2b6   : > { %v988_v24 = vsel %vm963_vm7, %v1426_v23, 0.0  ;;  %1178 = vmatpush.msrb.mxu0 %v1101_v50  ;;  %1229 = vmatpush.msrb.mxu3 %v1158_v29 }
 0x2b7   : > { %v972_v27 = vpop.xlane.xlu1 %971  ;;  %989 = vadd.xlane.f32.xlu2 %v988_v24  ;;  %v1139_v24 = vld [vmem:[#allocation7 + $0x138] sm:$0xff] }
 0x2b8   : > { %v978_v28 = vsub.f32 %v961_v15, %v972_v27  ;;  %1179 = vmatpush.msrb.mxu0 %v1100_v16  ;;  %v1123_v27 = vld [vmem:[#allocation7 + $0xb8] sm:$0xff] }
 0x2ba   : > { %v984_v30 = vmul.f32 1.442695, %v978_v28  ;;  %v1138_v28 = vld [vmem:[#allocation7 + $0x130] sm:$0xff] }
 0x2bc   : > { %1427 = vpow2.f32 %v984_v30  ;;  %v1122_v30 = vld [vmem:[#allocation7 + $0xb0] sm:$0xff] }
 0x2bd   : > { %1429 = vpow2.f32 %v982_v31  ;;  %v1137_v31 = vld [vmem:[#allocation7 + $0x128] sm:$0xff] }
 0x2bf   : > { %v975_v5 = vpop.xlane.xlu1 %974 }
 0x2c0   : > { %v979_v32 = vsub.f32 %v962_v18, %v975_v5  ;;  %v1141_v18 = vld [vmem:[#allocation7 + $0x148] sm:$0xff] }
 0x2c1   : > { %1210 = vmatpush.msrb.mxu2 %v1141_v18  ;;  %v1157_v5 = vld [vmem:[#allocation7 + $0x1c8] sm:$0xff] }
 0x2c2   : > { %v1701_v33 = vpop.eup %1427  ;;  %v986_v34 = vmul.f32 1.442695, %v979_v32  ;;  %v1121_v32 = vld [vmem:[#allocation7 + $0xa8] sm:$0xff]  ;;  %1230 = vmatpush.msrb.mxu3 %v1157_v5 }
 0x2c3   : > { %v994_v35 = vsel %vm963_vm7, %v1701_v33, 0.0  ;;  %v1705_v36 = vpop.eup %1429  ;;  %1211 = vmatpush.msrb.mxu2 %v1140_v21 }
 0x2c4   : > { %1431 = vpow2.f32 %v986_v34  ;;  %995 = vadd.xlane.f32.xlu0 %v994_v35  ;;  %v991_v39 = vsel %vm963_vm7, %v1705_v36, 0.0  ;;  %v1156_v34 = vld [vmem:[#allocation7 + $0x1c0] sm:$0xff] }
 0x2c5   : > { %1212 = vmatpush.msrb.mxu2 %v1139_v24  ;;  %v1120_v35 = vld [vmem:[#allocation7 + $0xa0] sm:$0xff]  ;;  %1231 = vmatpush.msrb.mxu3 %v1156_v34 }
 0x2c7   : > { %1213 = vmatpush.msrb.mxu2 %v1138_v28 }
 0x2c9   : > { %1214 = vmatpush.msrb.mxu2 %v1137_v31 }
 0x2ca   : > { %v1707_v37 = vpop.eup %1431 }
 0x2cb   : > { %v997_v38 = vsel %vm963_vm7, %v1707_v37, 0.0 }
 0x2cc   : > { %998 = vadd.xlane.f32.xlu1 %v997_v38  ;;  %992 = vadd.xlane.f32.xlu0 %v991_v39  ;;  %v1119_v38 = vld [vmem:[#allocation7 + $0x98] sm:$0xff]  ;;  %v1134_v39 = vld [vmem:[#allocation7 + $0x110] sm:$0xff] }
 0x32a   : > { %v990_v40 = vpop.xlane.xlu2 %989 }
 0x32b   : > { %1433 = vrcp.f32 %v990_v40  ;;  %v1154_v40 = vld [vmem:[#allocation7 + $0x1b0] sm:$0xff] }
 0x331   : > { %v1434_v53 = vpop.eup %1433 }
 0x332   : > { %v1004_v56 = vmul.f32 %v1434_v53, %v1426_v23  ;;  %v1124_v23 = vld [vmem:[#allocation7 + $0xc0] sm:$0xff] }
 0x333   : > { %1191 = vmatpush.msrb.mxu1 %v1124_v23 }
 0x334   : > { %1365 = vmatmul.msk.f32.vlgmr.msra.gmra.mxu0 %vm963_vm7, %v1004_v56 }
 0x335   : > { %1192 = vmatpush.msrb.mxu1 %v1123_v27 }
 0x337   : > { %v996_v2 = vpop.xlane.xlu0 %995  ;;  %1193 = vmatpush.msrb.mxu1 %v1122_v30 }
 0x338   : > { %1435 = vrcp.f32 %v996_v2 }
 0x339   : > { %1194 = vmatpush.msrb.mxu1 %v1121_v32 }
 0x33b   : > { %1195 = vmatpush.msrb.mxu1 %v1120_v35 }
 0x33d   : > { %1196 = vmatpush.msrb.mxu1 %v1119_v38 }
 0x33e   : > { %v1436_v7 = vpop.eup %1435 }
 0x33f   : > { %v1006_v0 = vmul.f32 %v1436_v7, %v1701_v33  ;;  %v999_v9 = vpop.xlane.xlu1 %998  ;;  %v993_v10 = vpop.xlane.xlu0 %992  ;;  %v1136_v33 = vld [vmem:[#allocation7 + $0x120] sm:$0xff]  ;;  %1197 = vmatpush.msrb.mxu1 %v1118_v42 }
 0x340   : > { %1437 = vrcp.f32 %v999_v9  ;;  %1215 = vmatpush.msrb.mxu2 %v1136_v33 }
 0x341   : > { %1439 = vrcp.f32 %v993_v10  ;;  %1367 = vmatmul.msk.f32.vlgmr.msra.gmra.mxu2 %vm963_vm7, %v1006_v0  ;;  %1198 = vmatpush.msrb.mxu1 %v1117_v44 }
 0x343   : > { %1199 = vmatpush.msrb.mxu1 %v1116_v47 }
 0x346   : > { %v1438_v12 = vpop.eup %1437 }
 0x347   : > { %v1440_v13 = vpop.eup %1439  ;;  %v1007_v14 = vmul.f32 %v1438_v12, %v1707_v37  ;;  %v1155_v37 = vld [vmem:[#allocation7 + $0x1b8] sm:$0xff] }
 0x348   : > { %v1005_v15 = vmul.f32 %v1440_v13, %v1705_v36  ;;  %v1135_v36 = vld [vmem:[#allocation7 + $0x118] sm:$0xff]  ;;  %1232 = vmatpush.msrb.mxu3 %v1155_v37 }
 0x349   : > { %1368 = vmatmul.msk.f32.vlgmr.msra.gmra.mxu3 %vm963_vm7, %v1007_v14  ;;  %1216 = vmatpush.msrb.mxu2 %v1135_v36 }
 0x34a   : > { %1366 = vmatmul.msk.f32.vlgmr.msra.gmra.mxu1 %vm963_vm7, %v1005_v15  ;;  %1233 = vmatpush.msrb.mxu3 %v1154_v40 }
 0x34b   : > { %1217 = vmatpush.msrb.mxu2 %v1134_v39 }
 0x34c   : > { %1234 = vmatpush.msrb.mxu3 %v1153_v43 }
 0x34d   : > { %1218 = vmatpush.msrb.mxu2 %v1133_v25 }
 0x34e   : > { %1235 = vmatpush.msrb.mxu3 %v1152_v46 }
 0x34f   : > { %1219 = vmatpush.msrb.mxu2 %v1132_v45 }
 0x350   : > { %1236 = vmatpush.msrb.mxu3 %v1151_v48 }
 0x352   : > { %1237 = vmatpush.msrb.mxu3 %v1150_v49 }
 0x354   : > { %1238 = vmatpush.msrb.mxu3 %v1149_v51 }
 0x356   : > { %1239 = vmatpush.msrb.mxu3 %v1148_v52 }
 0x3b1   : > { %v1028_v53 = vpop.f32.mrf.mxu0 }
 0x3b2   : > { %1180 = vmatmul.f32.vlgmr.msrb.gmra.mxu0 %v1028_v53 }
 0x3c4   : > { %v1074_v54 = vpop.f32.mrf.mxu2 }
 0x3c5   : > { %1220 = vmatmul.f32.vlgmr.msrb.gmra.mxu2 %v1074_v54 }
 0x3c7   : > { %v1051_v55 = vpop.f32.mrf.mxu1 }
 0x3c8   : > { %1200 = vmatmul.f32.vlgmr.msrb.gmra.mxu1 %v1051_v55 }
 0x3cc   : > { %v1097_v56 = vpop.f32.mrf.mxu3 }
 0x3cd   : > { %1240 = vmatmul.f32.vlgmr.msrb.gmra.mxu3 %v1097_v56 }
 0x42f   : > { %v1181_v58 = vpop.f32.mrf.mxu0 }
 0x445   : > { %v1201_v57 = vpop.f32.mrf.mxu1 }
 0x446   : > { %v1244_v60 = vadd.f32 %v1201_v57, %v1181_v58 }
 0x448   : > { %v1221_v59 = vpop.f32.mrf.mxu2 }
 0x449   : > { %v1245_v61 = vadd.f32 %v1244_v60, %v1221_v59 }
 0x450   : > { %v1241_v63 = vpop.f32.mrf.mxu3 }
 0x451   : > { %v1246_v1 = vadd.f32 %v1245_v61, %v1241_v63 }
 0x453   : > { %v1251_v2 = vadd.f32 %v1422_v62, %v1246_v1 }
 0x455   : > { %v1254_v4 = vadd.f32 %v1441_v3, %v1251_v2 }
 0x457   : > { %1255 = vst [vmem:[%s327_s19] sm:$0xff] %v1254_v4 }
 0x458 PF: > { %s19_s26 = sadd.s32 1, %s1532_s26   ;;  %s1750_s24 = smov %s1528_s25 }
 0x459   : > { %p16_p8 = scmp.ge.s32.totalorder %s19_s26, 4   ;;  %s1751_s25 = smov %s1753_s28 }
 0x45b   :  { %18 = sbr.rel (!%p16_p8) target bundleno = 3 (0x3), region = 102 }
 0x460   :  { %1281 = vsyncpa [#allocation6], 1 }
 0x461   :  { %1283 = vsyncpa [#allocation6 + $0x1], 1 }
 0x462   :  { %1284 = vsyncpa [#allocation8], 1 }

</bundles_post_ra>
